<compile_context>
chip_gen: v6e
topology: v6e:2x2x1
jax: 0.10.0
libtpu: 0.0.40
codegen_flags: <defaults>
</compile_context>

<pallas_src>
import functools

import jax
import jax.numpy as jnp
from jax import lax
from jax.experimental import pallas as pl
from jax.experimental.pallas import tpu as pltpu

NEG_SLOPE = 0.2   # GATConv default leaky-relu slope


# ----------------------------------------------------------------------------
# Per-layer kernel: one GATConv over a (TILE_N, N) block of destination rows.
# ----------------------------------------------------------------------------
def _gat_layer_kernel(hfull_ref, htile_ref, adj_ref, w_ref, wsrc_ref, wdst_ref,
                      bias_ref, out_ref, *, heads, out_ch, concat, apply_elu,
                      final_log_softmax, softmax_dtype):
    cdt = softmax_dtype
    hc = heads * out_ch

    hfull_bf = hfull_ref[...].astype(jnp.bfloat16)           # [N, Fin]  (source nodes)
    htile_bf = htile_ref[...].astype(jnp.bfloat16)           # [T, Fin]  (dst rows of tile)

    # Feature projection for all source nodes (MXU, f32 accumulate): [N, H*C].
    xh_all = jnp.dot(hfull_bf, w_ref[...].astype(jnp.bfloat16),
                     preferred_element_type=jnp.float32)

    # Attention scores via folded weight products (built once in the wrapper):
    #   src_t[h, j] = (x_j W_h) . a_src_h   — already row-oriented, no transpose needed.
    #   dst[i, h]   = (x_i W_h) . a_dst_h   — this tile's destination rows only.
    src_t = lax.dot_general(wsrc_ref[...].astype(jnp.bfloat16), hfull_bf,
                            (((1,), (1,)), ((), ())),
                            preferred_element_type=jnp.float32)          # [H, N]
    dst = jnp.dot(htile_bf, wdst_ref[...].astype(jnp.bfloat16),
                  preferred_element_type=jnp.float32)                    # [T, H]

    def head_alpha(hh):
        # e[i, j] = leaky_relu(a_dst . (x_i W) + a_src . (x_j W))
        e = dst[:, hh:hh + 1].astype(cdt) + src_t[hh:hh + 1, :].astype(cdt)   # [T, N]
        e = jnp.where(e > 0, e, NEG_SLOPE * e)
        # Masked softmax over source nodes j.  Unmasked row max is valid (shift cancels);
        # the bf16 adjacency tile is widened/kept in the compute dtype *inside* this
        # elementwise chain so no persistent f32 adj copy is pinned in VMEM.
        m = jnp.max(e, axis=1, keepdims=True)
        p = jnp.exp(e - m) * adj_ref[...].astype(cdt)
        denom = jnp.maximum(jnp.sum(p, axis=1, keepdims=True, dtype=jnp.float32), 1e-20)
        alpha = p * pl.reciprocal(denom, approx=True).astype(cdt)
        return alpha.astype(jnp.bfloat16)                                # [T, N]

    if concat:
        # Head concatenation done by the MXU for free: mask xh_all to each head's lane
        # range and accumulate the [T, H*C] contributions (extra output lanes are free,
        # no VMEM scratch / masked partial stores / lane shifts needed).
        col = lax.broadcasted_iota(jnp.int32, xh_all.shape, 1)           # [N, H*C]
        o = None
        for hh in range(heads):
            in_head = (col >= hh * out_ch) & (col < (hh + 1) * out_ch)
            xh_h = jnp.where(in_head, xh_all, 0.0)
            contrib = jnp.dot(head_alpha(hh), xh_h.astype(jnp.bfloat16),
                              preferred_element_type=jnp.float32)        # [T, H*C]
            o = contrib if o is None else o + contrib
    else:
        o = None
        for hh in range(heads):
            xh_h = xh_all[:, hh * out_ch:(hh + 1) * out_ch]              # [N, C]
            contrib = jnp.dot(head_alpha(hh), xh_h.astype(jnp.bfloat16),
                              preferred_element_type=jnp.float32)        # [T, C]
            o = contrib if o is None else o + contrib
        o = o * (1.0 / heads)                                            # PyG mean over heads

    o = o + bias_ref[...]

    if apply_elu:
        # exp only on the clamped negative branch -> no wasted EUP work / no inf.
        o = jnp.where(o > 0, o, jnp.exp(jnp.minimum(o, 0.0)) - 1.0)

    if final_log_softmax:
        mrow = jnp.max(o, axis=1, keepdims=True)
        s = o - mrow
        o = s - jnp.log(jnp.sum(jnp.exp(s), axis=1, keepdims=True))

    out_ref[...] = o.astype(out_ref.dtype)


# ----------------------------------------------------------------------------
# Wrapper glue: tiling / VMEM sizing / dtype selection
# ----------------------------------------------------------------------------
def _choose_tile_n(n, max_rows=1024, adj_tile_budget=4 << 20):
    """Largest destination-row tile that divides n, is a multiple of 8 (sublane), and
    keeps the streamed (tile, n) bf16 adjacency block within budget."""
    if n <= 8:
        return n
    cap = min(max_rows, max(8, adj_tile_budget // (2 * n)))
    best = None
    for t in range(8, n + 1, 8):
        if n % t == 0 and t <= cap:
            best = t
    return best if best is not None else n


def _vmem_cap_bytes():
    kind = jax.devices()[0].device_kind.lower()
    # v7x has 64 MiB VMEM per core -> leave headroom; v5e/v6e have 128 MiB.
    return (56 << 20) if "7" in kind else (100 << 20)


def _softmax_compute_dtype():
    kind = jax.devices()[0].device_kind.lower()
    if any(tag in kind for tag in ("v2", "v3", "v4", "v5")):
        return jnp.float32   # no bf16 VALU/EUP before v6: bf16 elementwise only adds converts
    return jnp.bfloat16      # v6e / v7x: halve VPU/EUP work on the N^2 softmax chain


def _vmem_limit_bytes(n, tile_n, fin, out_dim, sm_bytes, cap):
    need = (
        2 * tile_n * n * 2                    # double-buffered bf16 adj tile
        + 2 * n * fin * 4                     # full node-feature block
        + 2 * tile_n * fin * 4                # dst-row feature tile
        + 2 * tile_n * max(out_dim, 128) * 4  # output tile (lane padded)
        + n * max(out_dim, 128) * 4           # projected features / scores
        + 4 * tile_n * n * sm_bytes           # e / p / alpha live temporaries (estimate)
        + (4 << 20)                           # weights + headroom
    )
    return int(min(max(need, 16 << 20), cap))


def _layer_cost(n, fin, heads, out_ch):
    hc = heads * out_ch
    flops = 2 * n * fin * hc + 4 * n * fin * heads          # projection + score matmuls
    flops += heads * (2 * n * n * out_ch + 8 * n * n)       # aggregation + softmax chain
    trans = heads * n * n + n * hc                          # exp + elu / reciprocal
    bytes_accessed = n * n * 2 + 2 * n * fin * 4 + n * hc * 4 + fin * hc * 4
    return pl.CostEstimate(flops=int(flops), transcendentals=int(trans),
                           bytes_accessed=int(bytes_accessed))


def _gat_conv_call(h, adj, layer_params, *, heads, out_ch, concat, apply_elu,
                   final_log_softmax, tile_n, softmax_dtype, vmem_cap):
    w, wsrc_t, wdst, bias = layer_params
    n, fin = h.shape
    out_dim = heads * out_ch if concat else out_ch
    assert n % tile_n == 0 and (tile_n == n or tile_n % 8 == 0), (n, tile_n)

    kernel = functools.partial(
        _gat_layer_kernel, heads=heads, out_ch=out_ch, concat=concat,
        apply_elu=apply_elu, final_log_softmax=final_log_softmax,
        softmax_dtype=softmax_dtype)

    sm_bytes = jnp.dtype(softmax_dtype).itemsize
    vmem_limit = _vmem_limit_bytes(n, tile_n, fin, out_dim, sm_bytes, vmem_cap)

    return pl.pallas_call(
        kernel,
        grid=(n // tile_n,),
        in_specs=[
            pl.BlockSpec((n, fin), lambda i: (0, 0)),        # full node features (sources)
            pl.BlockSpec((tile_n, fin), lambda i: (i, 0)),   # this tile's destination rows
            pl.BlockSpec((tile_n, n), lambda i: (i, 0)),     # adjacency rows (bf16), streamed
            pl.BlockSpec(w.shape, lambda i: (0, 0)),
            pl.BlockSpec(wsrc_t.shape, lambda i: (0, 0)),
            pl.BlockSpec(wdst.shape, lambda i: (0, 0)),
            pl.BlockSpec(bias.shape, lambda i: (0, 0)),
        ],
        out_specs=pl.BlockSpec((tile_n, out_dim), lambda i: (i, 0)),
        out_shape=jax.ShapeDtypeStruct((n, out_dim), jnp.float32),
        compiler_params=pltpu.CompilerParams(
            dimension_semantics=("parallel",),
            vmem_limit_bytes=vmem_limit),
        cost_estimate=_layer_cost(n, fin, heads, out_ch),
    )(h, h, adj, w, wsrc_t, wdst, bias)


def gat_net_forward(x, adj, params, *, heads, hidden, nclass, output_heads, tile_n=None):
    """GAT_Net forward (eval mode): elu(conv1) -> elu(conv2) -> elu(conv3) -> conv3 -> log_softmax."""
    n = x.shape[0]
    if tile_n is None:
        tile_n = _choose_tile_n(n)
    common = dict(tile_n=tile_n, softmax_dtype=_softmax_compute_dtype(),
                  vmem_cap=_vmem_cap_bytes())
    p1, p2, p3 = params

    # x = F.dropout(x) -> identity in eval mode.
    h = _gat_conv_call(x, adj, p1, heads=heads, out_ch=hidden, concat=True,
                       apply_elu=True, final_log_softmax=False, **common)
    h = _gat_conv_call(h, adj, p2, heads=output_heads, out_ch=nclass, concat=False,
                       apply_elu=True, final_log_softmax=False, **common)
    h = _gat_conv_call(h, adj, p3, heads=output_heads, out_ch=nclass, concat=False,
                       apply_elu=True, final_log_softmax=False, **common)
    # conv3 applied again (as in the reference forward); log_softmax fused in-kernel.
    return _gat_conv_call(h, adj, p3, heads=output_heads, out_ch=nclass, concat=False,
                          apply_elu=False, final_log_softmax=True, **common)


# ----------------------------------------------------------------------------
# Parameters / adjacency construction
# ----------------------------------------------------------------------------
def _glorot(key, shape):
    fan_in, fan_out = shape[-2], shape[-1]
    lim = (6.0 / (fan_in + fan_out)) ** 0.5
    return jax.random.uniform(key, shape, jnp.float32, -lim, lim)


def init_gatconv_params(key, fin, out_channels, heads, concat):
    kw, ks, kd = jax.random.split(key, 3)
    w = _glorot(kw, (fin, heads * out_channels))           # lin weight (x @ W)
    att_src = _glorot(ks, (heads, out_channels))
    att_dst = _glorot(kd, (heads, out_channels))
    out_dim = heads * out_channels if concat else out_channels
    bias = jnp.zeros((1, out_dim), jnp.float32)
    return (w, att_src, att_dst, bias)


def fold_attention_params(raw, heads, out_channels):
    """Kernel-ready params: fold a_src / a_dst into weight products so attention scores
    come straight off the MXU (no per-head VPU reduces or M=1 matmuls in-kernel)."""
    w, att_src, att_dst, bias = raw
    fin = w.shape[0]
    w3 = w.reshape(fin, heads, out_channels)
    wsrc_t = jnp.einsum("fhc,hc->hf", w3, att_src)         # [H, Fin]
    wdst = jnp.einsum("fhc,hc->fh", w3, att_dst)           # [Fin, H]
    return (w, wsrc_t, wdst, bias)


def build_dense_adj(edge_index, num_nodes):
    """adj[dst, src] = 1 for every edge src->dst, plus self-loops (PyG default), as bf16
    (0/1 exactly representable) to halve the dominant HBM traffic."""
    src, dst = edge_index[0], edge_index[1]
    adj = jnp.zeros((num_nodes, num_nodes), jnp.float32).at[dst, src].set(1.0)
    adj = jnp.maximum(adj, jnp.eye(num_nodes, dtype=jnp.float32))
    return adj.astype(jnp.bfloat16)


# ----------------------------------------------------------------------------
# Pure-JAX reference (f32, dense) for validation
# ----------------------------------------------------------------------------
def _gatconv_ref(h, adj_f, w, att_src, att_dst, bias, heads, out_ch, concat):
    n = h.shape[0]
    xp = (h @ w).reshape(n, heads, out_ch)
    s_src = jnp.einsum("nhc,hc->nh", xp, att_src)
    s_dst = jnp.einsum("nhc,hc->nh", xp, att_dst)
    e = s_dst[:, None, :] + s_src[None, :, :]                 # [dst, src, head]
    e = jnp.where(e > 0, e, NEG_SLOPE * e)
    e = jnp.where(adj_f[:, :, None] > 0, e, -jnp.inf)
    alpha = jax.nn.softmax(e, axis=1)
    out = jnp.einsum("ijh,jhc->ihc", alpha, xp)
    out = out.reshape(n, heads * out_ch) if concat else out.mean(axis=1)
    return out + bias


def gat_net_reference(x, adj, raw_params, *, heads, hidden, nclass, output_heads):
    adj_f = adj.astype(jnp.float32)
    p1, p2, p3 = raw_params
    h = jax.nn.elu(_gatconv_ref(x, adj_f, *p1, heads, hidden, True))
    h = jax.nn.elu(_gatconv_ref(h, adj_f, *p2, output_heads, nclass, False))
    h = jax.nn.elu(_gatconv_ref(h, adj_f, *p3, output_heads, nclass, False))
    h = _gatconv_ref(h, adj_f, *p3, output_heads, nclass, False)
    return jax.nn.log_softmax(h, axis=1)


# ----------------------------------------------------------------------------
if __name__ == "__main__":
    # Small config consistent with GAT_Net(nfeat, nclass, args)
    N, NFEAT, NCLASS = 48, 16, 4
    HIDDEN, HEADS, OUTPUT_HEADS = 8, 2, 1
    E = 160
    TILE_N = 16   # exercises the row-tiled "parallel" grid (grid=(3,)); None = auto-pick

    key = jax.random.PRNGKey(0)
    kx, ke1, ke2, k1, k2, k3 = jax.random.split(key, 6)

    x = jax.random.normal(kx, (N, NFEAT), jnp.float32)
    edge_index = jnp.stack([
        jax.random.randint(ke1, (E,), 0, N),   # src
        jax.random.randint(ke2, (E,), 0, N),   # dst
    ], axis=0)
    adj = build_dense_adj(edge_index, N)

    raw_params = (
        init_gatconv_params(k1, NFEAT, HIDDEN, HEADS, concat=True),                    # conv1
        init_gatconv_params(k2, HIDDEN * HEADS, NCLASS, OUTPUT_HEADS, concat=False),   # conv2
        init_gatconv_params(k3, NCLASS, NCLASS, OUTPUT_HEADS, concat=False),           # conv3
    )
    params = (
        fold_attention_params(raw_params[0], HEADS, HIDDEN),
        fold_attention_params(raw_params[1], OUTPUT_HEADS, NCLASS),
        fold_attention_params(raw_params[2], OUTPUT_HEADS, NCLASS),
    )

    fwd = jax.jit(functools.partial(gat_net_forward, heads=HEADS, hidden=HIDDEN,
                                    nclass=NCLASS, output_heads=OUTPUT_HEADS,
                                    tile_n=TILE_N))
    out = jax.block_until_ready(fwd(x, adj, params))

    assert out.shape == (N, NCLASS), out.shape
    probs = jnp.exp(out)
    # rows of log_softmax must sum (in prob space) to 1
    assert jnp.allclose(jnp.sum(probs, axis=1), 1.0, atol=1e-3)

    # loose parity vs the f32 dense reference (bf16 MXU / softmax + approx reciprocal)
    ref = gat_net_reference(x, adj, raw_params, heads=HEADS, hidden=HIDDEN,
                            nclass=NCLASS, output_heads=OUTPUT_HEADS)
    max_err = float(jnp.max(jnp.abs(probs - jnp.exp(ref))))
    assert max_err < 5e-2, max_err

    print("KERNEL_OK")
</pallas_src>

<mosaic_0001>
module attributes {stable_mosaic.version = 11 : i64} {
  func.func @_gat_layer_kernel(%arg0: i32, %arg1: memref<48x16xf32, #tpu.memory_space<vmem>>, %arg2: memref<16x16xf32, #tpu.memory_space<vmem>>, %arg3: memref<16x48xbf16, #tpu.memory_space<vmem>>, %arg4: memref<16x16xf32, #tpu.memory_space<vmem>>, %arg5: memref<2x16xf32, #tpu.memory_space<vmem>>, %arg6: memref<16x2xf32, #tpu.memory_space<vmem>>, %arg7: memref<1x16xf32, #tpu.memory_space<vmem>>, %arg8: memref<16x16xf32, #tpu.memory_space<vmem>>) attributes {dimension_semantics = [#tpu.dimension_semantics<parallel>], iteration_bounds = array<i64: 3>, scalar_prefetch = 0 : i64, scratch_operands = 0 : i64, tpu.core_type = #tpu.core_type<tc>, window_params = [{pipeline_mode = #tpu.pipeline_mode<synchronous>, transform_indices = @transform_0, window_bounds = array<i64: 48, 16>}, {transform_indices = @transform_1, window_bounds = array<i64: 16, 16>}, {transform_indices = @transform_2, window_bounds = array<i64: 16, 48>}, {pipeline_mode = #tpu.pipeline_mode<synchronous>, transform_indices = @transform_3, window_bounds = array<i64: 16, 16>}, {pipeline_mode = #tpu.pipeline_mode<synchronous>, transform_indices = @transform_4, window_bounds = array<i64: 2, 16>}, {pipeline_mode = #tpu.pipeline_mode<synchronous>, transform_indices = @transform_5, window_bounds = array<i64: 16, 2>}, {pipeline_mode = #tpu.pipeline_mode<synchronous>, transform_indices = @transform_6, window_bounds = array<i64: 1, 16>}, {transform_indices = @transform_7, window_bounds = array<i64: 16, 16>}]} {
    %c0 = arith.constant 0 : index
    %c0_0 = arith.constant 0 : index
    %0 = vector.load %arg1[%c0, %c0_0] : memref<48x16xf32, #tpu.memory_space<vmem>>, vector<48x16xf32>
    %1 = arith.truncf %0 : vector<48x16xf32> to vector<48x16xbf16>
    %c0_1 = arith.constant 0 : index
    %c0_2 = arith.constant 0 : index
    %2 = vector.load %arg2[%c0_1, %c0_2] : memref<16x16xf32, #tpu.memory_space<vmem>>, vector<16x16xf32>
    %3 = arith.truncf %2 : vector<16x16xf32> to vector<16x16xbf16>
    %c0_3 = arith.constant 0 : index
    %c0_4 = arith.constant 0 : index
    %4 = vector.load %arg4[%c0_3, %c0_4] : memref<16x16xf32, #tpu.memory_space<vmem>>, vector<16x16xf32>
    %5 = arith.truncf %4 : vector<16x16xf32> to vector<16x16xbf16>
    %cst = arith.constant dense<0.000000e+00> : vector<48x16xf32>
    %6 = tpu.matmul %1, %5, %cst {dimension_numbers = #tpu.dot_dimension_numbers<[1], [0], [0], [1], [0, 0, 1, 1], [], []>} : vector<48x16xbf16>, vector<16x16xbf16>, vector<48x16xf32> -> vector<48x16xf32>
    %c0_5 = arith.constant 0 : index
    %c0_6 = arith.constant 0 : index
    %7 = vector.load %arg5[%c0_5, %c0_6] : memref<2x16xf32, #tpu.memory_space<vmem>>, vector<2x16xf32>
    %8 = arith.truncf %7 : vector<2x16xf32> to vector<2x16xbf16>
    %cst_7 = arith.constant dense<0.000000e+00> : vector<2x48xf32>
    %9 = tpu.matmul %8, %1, %cst_7 {dimension_numbers = #tpu.dot_dimension_numbers<[1], [1], [0], [0], [0, 0, 1, 0], [], []>} : vector<2x16xbf16>, vector<48x16xbf16>, vector<2x48xf32> -> vector<2x48xf32>
    %c0_8 = arith.constant 0 : index
    %c0_9 = arith.constant 0 : index
    %10 = vector.load %arg6[%c0_8, %c0_9] : memref<16x2xf32, #tpu.memory_space<vmem>>, vector<16x2xf32>
    %11 = arith.truncf %10 : vector<16x2xf32> to vector<16x2xbf16>
    %cst_10 = arith.constant dense<0.000000e+00> : vector<16x2xf32>
    %12 = tpu.matmul %3, %11, %cst_10 {dimension_numbers = #tpu.dot_dimension_numbers<[1], [0], [0], [1], [0, 0, 1, 1], [], []>} : vector<16x16xbf16>, vector<16x2xbf16>, vector<16x2xf32> -> vector<16x2xf32>
    %13 = tpu.iota {dimensions = array<i32: 1>} : vector<48x16xi32>
    %c0_i32 = arith.constant 0 : i32
    %14 = vector.broadcast %c0_i32 : i32 to vector<48x16xi32>
    %15 = arith.cmpi sge, %13, %14 : vector<48x16xi32>
    %c8_i32 = arith.constant 8 : i32
    %16 = vector.broadcast %c8_i32 : i32 to vector<48x16xi32>
    %17 = arith.cmpi slt, %13, %16 : vector<48x16xi32>
    %18 = arith.andi %15, %17 : vector<48x16xi1>
    %cst_11 = arith.constant 0.000000e+00 : f32
    %19 = vector.broadcast %cst_11 : f32 to vector<48x16xf32>
    %20 = arith.select %18, %6, %19 : vector<48x16xi1>, vector<48x16xf32>
    %21 = vector.extract_strided_slice %12 {offsets = [0, 0], sizes = [16, 1], strides = [1, 1]} : vector<16x2xf32> to vector<16x1xf32>
    %22 = arith.truncf %21 : vector<16x1xf32> to vector<16x1xbf16>
    %23 = vector.extract_strided_slice %9 {offsets = [0, 0], sizes = [1, 48], strides = [1, 1]} : vector<2x48xf32> to vector<1x48xf32>
    %24 = arith.truncf %23 : vector<1x48xf32> to vector<1x48xbf16>
    %25 = vector.broadcast %22 : vector<16x1xbf16> to vector<16x48xbf16>
    %26 = vector.broadcast %24 : vector<1x48xbf16> to vector<16x48xbf16>
    %27 = arith.addf %25, %26 : vector<16x48xbf16>
    %cst_12 = arith.constant 0.000000e+00 : bf16
    %28 = vector.broadcast %cst_12 : bf16 to vector<16x48xbf16>
    %29 = arith.cmpf ogt, %27, %28 : vector<16x48xbf16>
    %cst_13 = arith.constant 2.001950e-01 : bf16
    %30 = vector.broadcast %cst_13 : bf16 to vector<16x48xbf16>
    %31 = arith.mulf %30, %27 : vector<16x48xbf16>
    %32 = arith.select %29, %27, %31 : vector<16x48xi1>, vector<16x48xbf16>
    %cst_14 = arith.constant dense<0xFF80> : vector<16xbf16>
    %33 = vector.multi_reduction <maximumf>, %32, %cst_14 [1] : vector<16x48xbf16> to vector<16xbf16>
    %34 = vector.shape_cast %33 : vector<16xbf16> to vector<16x1xbf16>
    %35 = vector.broadcast %34 : vector<16x1xbf16> to vector<16x48xbf16>
    %36 = arith.subf %32, %35 : vector<16x48xbf16>
    %37 = math.exp %36 : vector<16x48xbf16>
    %c0_15 = arith.constant 0 : index
    %c0_16 = arith.constant 0 : index
    %38 = vector.load %arg3[%c0_15, %c0_16] : memref<16x48xbf16, #tpu.memory_space<vmem>>, vector<16x48xbf16>
    %39 = arith.mulf %37, %38 : vector<16x48xbf16>
    %40 = arith.extf %39 : vector<16x48xbf16> to vector<16x48xf32>
    %cst_17 = arith.constant dense<0.000000e+00> : vector<16xf32>
    %41 = vector.multi_reduction <add>, %40, %cst_17 [1] : vector<16x48xf32> to vector<16xf32>
    %42 = vector.shape_cast %41 : vector<16xf32> to vector<16x1xf32>
    %cst_18 = arith.constant 9.99999968E-21 : f32
    %43 = vector.broadcast %cst_18 : f32 to vector<16x1xf32>
    %44 = arith.maximumf %42, %43 : vector<16x1xf32>
    %45 = tpu.reciprocal %44 {approx = true} : vector<16x1xf32> -> vector<16x1xf32>
    %46 = arith.truncf %45 : vector<16x1xf32> to vector<16x1xbf16>
    %47 = vector.broadcast %46 : vector<16x1xbf16> to vector<16x48xbf16>
    %48 = arith.mulf %39, %47 : vector<16x48xbf16>
    %49 = arith.truncf %20 : vector<48x16xf32> to vector<48x16xbf16>
    %cst_19 = arith.constant dense<0.000000e+00> : vector<16x16xf32>
    %50 = tpu.matmul %48, %49, %cst_19 {dimension_numbers = #tpu.dot_dimension_numbers<[1], [0], [0], [1], [0, 0, 1, 1], [], []>} : vector<16x48xbf16>, vector<48x16xbf16>, vector<16x16xf32> -> vector<16x16xf32>
    %c8_i32_20 = arith.constant 8 : i32
    %51 = vector.broadcast %c8_i32_20 : i32 to vector<48x16xi32>
    %52 = arith.cmpi sge, %13, %51 : vector<48x16xi32>
    %c16_i32 = arith.constant 16 : i32
    %53 = vector.broadcast %c16_i32 : i32 to vector<48x16xi32>
    %54 = arith.cmpi slt, %13, %53 : vector<48x16xi32>
    %55 = arith.andi %52, %54 : vector<48x16xi1>
    %cst_21 = arith.constant 0.000000e+00 : f32
    %56 = vector.broadcast %cst_21 : f32 to vector<48x16xf32>
    %57 = arith.select %55, %6, %56 : vector<48x16xi1>, vector<48x16xf32>
    %58 = vector.extract_strided_slice %12 {offsets = [0, 1], sizes = [16, 1], strides = [1, 1]} : vector<16x2xf32> to vector<16x1xf32>
    %59 = arith.truncf %58 : vector<16x1xf32> to vector<16x1xbf16>
    %60 = vector.extract_strided_slice %9 {offsets = [1, 0], sizes = [1, 48], strides = [1, 1]} : vector<2x48xf32> to vector<1x48xf32>
    %61 = arith.truncf %60 : vector<1x48xf32> to vector<1x48xbf16>
    %62 = vector.broadcast %59 : vector<16x1xbf16> to vector<16x48xbf16>
    %63 = vector.broadcast %61 : vector<1x48xbf16> to vector<16x48xbf16>
    %64 = arith.addf %62, %63 : vector<16x48xbf16>
    %cst_22 = arith.constant 0.000000e+00 : bf16
    %65 = vector.broadcast %cst_22 : bf16 to vector<16x48xbf16>
    %66 = arith.cmpf ogt, %64, %65 : vector<16x48xbf16>
    %cst_23 = arith.constant 2.001950e-01 : bf16
    %67 = vector.broadcast %cst_23 : bf16 to vector<16x48xbf16>
    %68 = arith.mulf %67, %64 : vector<16x48xbf16>
    %69 = arith.select %66, %64, %68 : vector<16x48xi1>, vector<16x48xbf16>
    %cst_24 = arith.constant dense<0xFF80> : vector<16xbf16>
    %70 = vector.multi_reduction <maximumf>, %69, %cst_24 [1] : vector<16x48xbf16> to vector<16xbf16>
    %71 = vector.shape_cast %70 : vector<16xbf16> to vector<16x1xbf16>
    %72 = vector.broadcast %71 : vector<16x1xbf16> to vector<16x48xbf16>
    %73 = arith.subf %69, %72 : vector<16x48xbf16>
    %74 = math.exp %73 : vector<16x48xbf16>
    %c0_25 = arith.constant 0 : index
    %c0_26 = arith.constant 0 : index
    %75 = vector.load %arg3[%c0_25, %c0_26] : memref<16x48xbf16, #tpu.memory_space<vmem>>, vector<16x48xbf16>
    %76 = arith.mulf %74, %75 : vector<16x48xbf16>
    %77 = arith.extf %76 : vector<16x48xbf16> to vector<16x48xf32>
    %cst_27 = arith.constant dense<0.000000e+00> : vector<16xf32>
    %78 = vector.multi_reduction <add>, %77, %cst_27 [1] : vector<16x48xf32> to vector<16xf32>
    %79 = vector.shape_cast %78 : vector<16xf32> to vector<16x1xf32>
    %cst_28 = arith.constant 9.99999968E-21 : f32
    %80 = vector.broadcast %cst_28 : f32 to vector<16x1xf32>
    %81 = arith.maximumf %79, %80 : vector<16x1xf32>
    %82 = tpu.reciprocal %81 {approx = true} : vector<16x1xf32> -> vector<16x1xf32>
    %83 = arith.truncf %82 : vector<16x1xf32> to vector<16x1xbf16>
    %84 = vector.broadcast %83 : vector<16x1xbf16> to vector<16x48xbf16>
    %85 = arith.mulf %76, %84 : vector<16x48xbf16>
    %86 = arith.truncf %57 : vector<48x16xf32> to vector<48x16xbf16>
    %cst_29 = arith.constant dense<0.000000e+00> : vector<16x16xf32>
    %87 = tpu.matmul %85, %86, %cst_29 {dimension_numbers = #tpu.dot_dimension_numbers<[1], [0], [0], [1], [0, 0, 1, 1], [], []>} : vector<16x48xbf16>, vector<48x16xbf16>, vector<16x16xf32> -> vector<16x16xf32>
    %88 = arith.addf %50, %87 : vector<16x16xf32>
    %c0_30 = arith.constant 0 : index
    %c0_31 = arith.constant 0 : index
    %89 = vector.load %arg7[%c0_30, %c0_31] : memref<1x16xf32, #tpu.memory_space<vmem>>, vector<1x16xf32>
    %90 = vector.broadcast %89 : vector<1x16xf32> to vector<16x16xf32>
    %91 = arith.addf %88, %90 : vector<16x16xf32>
    %cst_32 = arith.constant 0.000000e+00 : f32
    %92 = vector.broadcast %cst_32 : f32 to vector<16x16xf32>
    %93 = arith.cmpf ogt, %91, %92 : vector<16x16xf32>
    %cst_33 = arith.constant 0.000000e+00 : f32
    %94 = vector.broadcast %cst_33 : f32 to vector<16x16xf32>
    %95 = arith.minimumf %91, %94 : vector<16x16xf32>
    %96 = math.exp %95 : vector<16x16xf32>
    %cst_34 = arith.constant 1.000000e+00 : f32
    %97 = vector.broadcast %cst_34 : f32 to vector<16x16xf32>
    %98 = arith.subf %96, %97 : vector<16x16xf32>
    %99 = arith.select %93, %91, %98 : vector<16x16xi1>, vector<16x16xf32>
    %c0_35 = arith.constant 0 : index
    %c0_36 = arith.constant 0 : index
    %100 = vector.load %arg8[%c0_35, %c0_36] : memref<16x16xf32, #tpu.memory_space<vmem>>, vector<16x16xf32>
    tpu.vector_store %arg8[%c0_35, %c0_36], %99 {strides = array<i32>} : memref<16x16xf32, #tpu.memory_space<vmem>>, vector<16x16xf32>,
    return
  }
  func.func @transform_0(%arg0: i32) -> (i32, i32) {
    %c0_i32 = arith.constant 0 : i32
    %c0_i32_0 = arith.constant 0 : i32
    %c0_i32_1 = arith.constant 0 : i32
    return %c0_i32, %c0_i32_0 : i32, i32
  }
  func.func @transform_1(%arg0: i32) -> (i32, i32) {
    %c0_i32 = arith.constant 0 : i32
    %c0_i32_0 = arith.constant 0 : i32
    return %arg0, %c0_i32 : i32, i32
  }
  func.func @transform_2(%arg0: i32) -> (i32, i32) {
    %c0_i32 = arith.constant 0 : i32
    %c0_i32_0 = arith.constant 0 : i32
    return %arg0, %c0_i32 : i32, i32
  }
  func.func @transform_3(%arg0: i32) -> (i32, i32) {
    %c0_i32 = arith.constant 0 : i32
    %c0_i32_0 = arith.constant 0 : i32
    %c0_i32_1 = arith.constant 0 : i32
    return %c0_i32, %c0_i32_0 : i32, i32
  }
  func.func @transform_4(%arg0: i32) -> (i32, i32) {
    %c0_i32 = arith.constant 0 : i32
    %c0_i32_0 = arith.constant 0 : i32
    %c0_i32_1 = arith.constant 0 : i32
    return %c0_i32, %c0_i32_0 : i32, i32
  }
  func.func @transform_5(%arg0: i32) -> (i32, i32) {
    %c0_i32 = arith.constant 0 : i32
    %c0_i32_0 = arith.constant 0 : i32
    %c0_i32_1 = arith.constant 0 : i32
    return %c0_i32, %c0_i32_0 : i32, i32
  }
  func.func @transform_6(%arg0: i32) -> (i32, i32) {
    %c0_i32 = arith.constant 0 : i32
    %c0_i32_0 = arith.constant 0 : i32
    %c0_i32_1 = arith.constant 0 : i32
    return %c0_i32, %c0_i32_0 : i32, i32
  }
  func.func @transform_7(%arg0: i32) -> (i32, i32) {
    %c0_i32 = arith.constant 0 : i32
    %c0_i32_0 = arith.constant 0 : i32
    return %arg0, %c0_i32 : i32, i32
  }
}

module attributes {stable_mosaic.version = 11 : i64} {
  func.func @_gat_layer_kernel(%arg0: i32, %arg1: memref<48x4xf32, #tpu.memory_space<vmem>>, %arg2: memref<16x4xf32, #tpu.memory_space<vmem>>, %arg3: memref<16x48xbf16, #tpu.memory_space<vmem>>, %arg4: memref<4x4xf32, #tpu.memory_space<vmem>>, %arg5: memref<1x4xf32, #tpu.memory_space<vmem>>, %arg6: memref<4x1xf32, #tpu.memory_space<vmem>>, %arg7: memref<1x4xf32, #tpu.memory_space<vmem>>, %arg8: memref<16x4xf32, #tpu.memory_space<vmem>>) attributes {dimension_semantics = [#tpu.dimension_semantics<parallel>], iteration_bounds = array<i64: 3>, scalar_prefetch = 0 : i64, scratch_operands = 0 : i64, tpu.core_type = #tpu.core_type<tc>, window_params = [{pipeline_mode = #tpu.pipeline_mode<synchronous>, transform_indices = @transform_0, window_bounds = array<i64: 48, 4>}, {transform_indices = @transform_1, window_bounds = array<i64: 16, 4>}, {transform_indices = @transform_2, window_bounds = array<i64: 16, 48>}, {pipeline_mode = #tpu.pipeline_mode<synchronous>, transform_indices = @transform_3, window_bounds = array<i64: 4, 4>}, {pipeline_mode = #tpu.pipeline_mode<synchronous>, transform_indices = @transform_4, window_bounds = array<i64: 1, 4>}, {pipeline_mode = #tpu.pipeline_mode<synchronous>, transform_indices = @transform_5, window_bounds = array<i64: 4, 1>}, {pipeline_mode = #tpu.pipeline_mode<synchronous>, transform_indices = @transform_6, window_bounds = array<i64: 1, 4>}, {transform_indices = @transform_7, window_bounds = array<i64: 16, 4>}]} {
    %c0 = arith.constant 0 : index
    %c0_0 = arith.constant 0 : index
    %0 = vector.load %arg1[%c0, %c0_0] : memref<48x4xf32, #tpu.memory_space<vmem>>, vector<48x4xf32>
    %1 = arith.truncf %0 : vector<48x4xf32> to vector<48x4xbf16>
    %c0_1 = arith.constant 0 : index
    %c0_2 = arith.constant 0 : index
    %2 = vector.load %arg2[%c0_1, %c0_2] : memref<16x4xf32, #tpu.memory_space<vmem>>, vector<16x4xf32>
    %3 = arith.truncf %2 : vector<16x4xf32> to vector<16x4xbf16>
    %c0_3 = arith.constant 0 : index
    %c0_4 = arith.constant 0 : index
    %4 = vector.load %arg4[%c0_3, %c0_4] : memref<4x4xf32, #tpu.memory_space<vmem>>, vector<4x4xf32>
    %5 = arith.truncf %4 : vector<4x4xf32> to vector<4x4xbf16>
    %cst = arith.constant dense<0.000000e+00> : vector<48x4xf32>
    %6 = tpu.matmul %1, %5, %cst {dimension_numbers = #tpu.dot_dimension_numbers<[1], [0], [0], [1], [0, 0, 1, 1], [], []>} : vector<48x4xbf16>, vector<4x4xbf16>, vector<48x4xf32> -> vector<48x4xf32>
    %c0_5 = arith.constant 0 : index
    %c0_6 = arith.constant 0 : index
    %7 = vector.load %arg5[%c0_5, %c0_6] : memref<1x4xf32, #tpu.memory_space<vmem>>, vector<1x4xf32>
    %8 = arith.truncf %7 : vector<1x4xf32> to vector<1x4xbf16>
    %cst_7 = arith.constant dense<0.000000e+00> : vector<1x48xf32>
    %9 = tpu.matmul %8, %1, %cst_7 {dimension_numbers = #tpu.dot_dimension_numbers<[1], [1], [0], [0], [0, 0, 1, 0], [], []>} : vector<1x4xbf16>, vector<48x4xbf16>, vector<1x48xf32> -> vector<1x48xf32>
    %c0_8 = arith.constant 0 : index
    %c0_9 = arith.constant 0 : index
    %10 = vector.load %arg6[%c0_8, %c0_9] : memref<4x1xf32, #tpu.memory_space<vmem>>, vector<4x1xf32>
    %11 = arith.truncf %10 : vector<4x1xf32> to vector<4x1xbf16>
    %cst_10 = arith.constant dense<0.000000e+00> : vector<16x1xf32>
    %12 = tpu.matmul %3, %11, %cst_10 {dimension_numbers = #tpu.dot_dimension_numbers<[1], [0], [0], [1], [0, 0, 1, 1], [], []>} : vector<16x4xbf16>, vector<4x1xbf16>, vector<16x1xf32> -> vector<16x1xf32>
    %13 = arith.truncf %12 : vector<16x1xf32> to vector<16x1xbf16>
    %14 = arith.truncf %9 : vector<1x48xf32> to vector<1x48xbf16>
    %15 = vector.broadcast %13 : vector<16x1xbf16> to vector<16x48xbf16>
    %16 = vector.broadcast %14 : vector<1x48xbf16> to vector<16x48xbf16>
    %17 = arith.addf %15, %16 : vector<16x48xbf16>
    %cst_11 = arith.constant 0.000000e+00 : bf16
    %18 = vector.broadcast %cst_11 : bf16 to vector<16x48xbf16>
    %19 = arith.cmpf ogt, %17, %18 : vector<16x48xbf16>
    %cst_12 = arith.constant 2.001950e-01 : bf16
    %20 = vector.broadcast %cst_12 : bf16 to vector<16x48xbf16>
    %21 = arith.mulf %20, %17 : vector<16x48xbf16>
    %22 = arith.select %19, %17, %21 : vector<16x48xi1>, vector<16x48xbf16>
    %cst_13 = arith.constant dense<0xFF80> : vector<16xbf16>
    %23 = vector.multi_reduction <maximumf>, %22, %cst_13 [1] : vector<16x48xbf16> to vector<16xbf16>
    %24 = vector.shape_cast %23 : vector<16xbf16> to vector<16x1xbf16>
    %25 = vector.broadcast %24 : vector<16x1xbf16> to vector<16x48xbf16>
    %26 = arith.subf %22, %25 : vector<16x48xbf16>
    %27 = math.exp %26 : vector<16x48xbf16>
    %c0_14 = arith.constant 0 : index
    %c0_15 = arith.constant 0 : index
    %28 = vector.load %arg3[%c0_14, %c0_15] : memref<16x48xbf16, #tpu.memory_space<vmem>>, vector<16x48xbf16>
    %29 = arith.mulf %27, %28 : vector<16x48xbf16>
    %30 = arith.extf %29 : vector<16x48xbf16> to vector<16x48xf32>
    %cst_16 = arith.constant dense<0.000000e+00> : vector<16xf32>
    %31 = vector.multi_reduction <add>, %30, %cst_16 [1] : vector<16x48xf32> to vector<16xf32>
    %32 = vector.shape_cast %31 : vector<16xf32> to vector<16x1xf32>
    %cst_17 = arith.constant 9.99999968E-21 : f32
    %33 = vector.broadcast %cst_17 : f32 to vector<16x1xf32>
    %34 = arith.maximumf %32, %33 : vector<16x1xf32>
    %35 = tpu.reciprocal %34 {approx = true} : vector<16x1xf32> -> vector<16x1xf32>
    %36 = arith.truncf %35 : vector<16x1xf32> to vector<16x1xbf16>
    %37 = vector.broadcast %36 : vector<16x1xbf16> to vector<16x48xbf16>
    %38 = arith.mulf %29, %37 : vector<16x48xbf16>
    %39 = arith.truncf %6 : vector<48x4xf32> to vector<48x4xbf16>
    %cst_18 = arith.constant dense<0.000000e+00> : vector<16x4xf32>
    %40 = tpu.matmul %38, %39, %cst_18 {dimension_numbers = #tpu.dot_dimension_numbers<[1], [0], [0], [1], [0, 0, 1, 1], [], []>} : vector<16x48xbf16>, vector<48x4xbf16>, vector<16x4xf32> -> vector<16x4xf32>
    %cst_19 = arith.constant 1.000000e+00 : f32
    %41 = vector.broadcast %cst_19 : f32 to vector<16x4xf32>
    %42 = arith.mulf %40, %41 : vector<16x4xf32>
    %c0_20 = arith.constant 0 : index
    %c0_21 = arith.constant 0 : index
    %43 = vector.load %arg7[%c0_20, %c0_21] : memref<1x4xf32, #tpu.memory_space<vmem>>, vector<1x4xf32>
    %44 = vector.broadcast %43 : vector<1x4xf32> to vector<16x4xf32>
    %45 = arith.addf %42, %44 : vector<16x4xf32>
    %cst_22 = arith.constant 0.000000e+00 : f32
    %46 = vector.broadcast %cst_22 : f32 to vector<16x4xf32>
    %47 = arith.cmpf ogt, %45, %46 : vector<16x4xf32>
    %cst_23 = arith.constant 0.000000e+00 : f32
    %48 = vector.broadcast %cst_23 : f32 to vector<16x4xf32>
    %49 = arith.minimumf %45, %48 : vector<16x4xf32>
    %50 = math.exp %49 : vector<16x4xf32>
    %cst_24 = arith.constant 1.000000e+00 : f32
    %51 = vector.broadcast %cst_24 : f32 to vector<16x4xf32>
    %52 = arith.subf %50, %51 : vector<16x4xf32>
    %53 = arith.select %47, %45, %52 : vector<16x4xi1>, vector<16x4xf32>
    %c0_25 = arith.constant 0 : index
    %c0_26 = arith.constant 0 : index
    %54 = vector.load %arg8[%c0_25, %c0_26] : memref<16x4xf32, #tpu.memory_space<vmem>>, vector<16x4xf32>
    tpu.vector_store %arg8[%c0_25, %c0_26], %53 {strides = array<i32>} : memref<16x4xf32, #tpu.memory_space<vmem>>, vector<16x4xf32>,
    return
  }
  func.func @transform_0(%arg0: i32) -> (i32, i32) {
    %c0_i32 = arith.constant 0 : i32
    %c0_i32_0 = arith.constant 0 : i32
    %c0_i32_1 = arith.constant 0 : i32
    return %c0_i32, %c0_i32_0 : i32, i32
  }
  func.func @transform_1(%arg0: i32) -> (i32, i32) {
    %c0_i32 = arith.constant 0 : i32
    %c0_i32_0 = arith.constant 0 : i32
    return %arg0, %c0_i32 : i32, i32
  }
  func.func @transform_2(%arg0: i32) -> (i32, i32) {
    %c0_i32 = arith.constant 0 : i32
    %c0_i32_0 = arith.constant 0 : i32
    return %arg0, %c0_i32 : i32, i32
  }
  func.func @transform_3(%arg0: i32) -> (i32, i32) {
    %c0_i32 = arith.constant 0 : i32
    %c0_i32_0 = arith.constant 0 : i32
    %c0_i32_1 = arith.constant 0 : i32
    return %c0_i32, %c0_i32_0 : i32, i32
  }
  func.func @transform_4(%arg0: i32) -> (i32, i32) {
    %c0_i32 = arith.constant 0 : i32
    %c0_i32_0 = arith.constant 0 : i32
    %c0_i32_1 = arith.constant 0 : i32
    return %c0_i32, %c0_i32_0 : i32, i32
  }
  func.func @transform_5(%arg0: i32) -> (i32, i32) {
    %c0_i32 = arith.constant 0 : i32
    %c0_i32_0 = arith.constant 0 : i32
    %c0_i32_1 = arith.constant 0 : i32
    return %c0_i32, %c0_i32_0 : i32, i32
  }
  func.func @transform_6(%arg0: i32) -> (i32, i32) {
    %c0_i32 = arith.constant 0 : i32
    %c0_i32_0 = arith.constant 0 : i32
    %c0_i32_1 = arith.constant 0 : i32
    return %c0_i32, %c0_i32_0 : i32, i32
  }
  func.func @transform_7(%arg0: i32) -> (i32, i32) {
    %c0_i32 = arith.constant 0 : i32
    %c0_i32_0 = arith.constant 0 : i32
    return %arg0, %c0_i32 : i32, i32
  }
}

module attributes {stable_mosaic.version = 11 : i64} {
  func.func @_gat_layer_kernel(%arg0: i32, %arg1: memref<48x16xf32, #tpu.memory_space<vmem>>, %arg2: memref<16x16xf32, #tpu.memory_space<vmem>>, %arg3: memref<16x48xbf16, #tpu.memory_space<vmem>>, %arg4: memref<16x4xf32, #tpu.memory_space<vmem>>, %arg5: memref<1x16xf32, #tpu.memory_space<vmem>>, %arg6: memref<16x1xf32, #tpu.memory_space<vmem>>, %arg7: memref<1x4xf32, #tpu.memory_space<vmem>>, %arg8: memref<16x4xf32, #tpu.memory_space<vmem>>) attributes {dimension_semantics = [#tpu.dimension_semantics<parallel>], iteration_bounds = array<i64: 3>, scalar_prefetch = 0 : i64, scratch_operands = 0 : i64, tpu.core_type = #tpu.core_type<tc>, window_params = [{pipeline_mode = #tpu.pipeline_mode<synchronous>, transform_indices = @transform_0, window_bounds = array<i64: 48, 16>}, {transform_indices = @transform_1, window_bounds = array<i64: 16, 16>}, {transform_indices = @transform_2, window_bounds = array<i64: 16, 48>}, {pipeline_mode = #tpu.pipeline_mode<synchronous>, transform_indices = @transform_3, window_bounds = array<i64: 16, 4>}, {pipeline_mode = #tpu.pipeline_mode<synchronous>, transform_indices = @transform_4, window_bounds = array<i64: 1, 16>}, {pipeline_mode = #tpu.pipeline_mode<synchronous>, transform_indices = @transform_5, window_bounds = array<i64: 16, 1>}, {pipeline_mode = #tpu.pipeline_mode<synchronous>, transform_indices = @transform_6, window_bounds = array<i64: 1, 4>}, {transform_indices = @transform_7, window_bounds = array<i64: 16, 4>}]} {
    %c0 = arith.constant 0 : index
    %c0_0 = arith.constant 0 : index
    %0 = vector.load %arg1[%c0, %c0_0] : memref<48x16xf32, #tpu.memory_space<vmem>>, vector<48x16xf32>
    %1 = arith.truncf %0 : vector<48x16xf32> to vector<48x16xbf16>
    %c0_1 = arith.constant 0 : index
    %c0_2 = arith.constant 0 : index
    %2 = vector.load %arg2[%c0_1, %c0_2] : memref<16x16xf32, #tpu.memory_space<vmem>>, vector<16x16xf32>
    %3 = arith.truncf %2 : vector<16x16xf32> to vector<16x16xbf16>
    %c0_3 = arith.constant 0 : index
    %c0_4 = arith.constant 0 : index
    %4 = vector.load %arg4[%c0_3, %c0_4] : memref<16x4xf32, #tpu.memory_space<vmem>>, vector<16x4xf32>
    %5 = arith.truncf %4 : vector<16x4xf32> to vector<16x4xbf16>
    %cst = arith.constant dense<0.000000e+00> : vector<48x4xf32>
    %6 = tpu.matmul %1, %5, %cst {dimension_numbers = #tpu.dot_dimension_numbers<[1], [0], [0], [1], [0, 0, 1, 1], [], []>} : vector<48x16xbf16>, vector<16x4xbf16>, vector<48x4xf32> -> vector<48x4xf32>
    %c0_5 = arith.constant 0 : index
    %c0_6 = arith.constant 0 : index
    %7 = vector.load %arg5[%c0_5, %c0_6] : memref<1x16xf32, #tpu.memory_space<vmem>>, vector<1x16xf32>
    %8 = arith.truncf %7 : vector<1x16xf32> to vector<1x16xbf16>
    %cst_7 = arith.constant dense<0.000000e+00> : vector<1x48xf32>
    %9 = tpu.matmul %8, %1, %cst_7 {dimension_numbers = #tpu.dot_dimension_numbers<[1], [1], [0], [0], [0, 0, 1, 0], [], []>} : vector<1x16xbf16>, vector<48x16xbf16>, vector<1x48xf32> -> vector<1x48xf32>
    %c0_8 = arith.constant 0 : index
    %c0_9 = arith.constant 0 : index
    %10 = vector.load %arg6[%c0_8, %c0_9] : memref<16x1xf32, #tpu.memory_space<vmem>>, vector<16x1xf32>
    %11 = arith.truncf %10 : vector<16x1xf32> to vector<16x1xbf16>
    %cst_10 = arith.constant dense<0.000000e+00> : vector<16x1xf32>
    %12 = tpu.matmul %3, %11, %cst_10 {dimension_numbers = #tpu.dot_dimension_numbers<[1], [0], [0], [1], [0, 0, 1, 1], [], []>} : vector<16x16xbf16>, vector<16x1xbf16>, vector<16x1xf32> -> vector<16x1xf32>
    %13 = arith.truncf %12 : vector<16x1xf32> to vector<16x1xbf16>
    %14 = arith.truncf %9 : vector<1x48xf32> to vector<1x48xbf16>
    %15 = vector.broadcast %13 : vector<16x1xbf16> to vector<16x48xbf16>
    %16 = vector.broadcast %14 : vector<1x48xbf16> to vector<16x48xbf16>
    %17 = arith.addf %15, %16 : vector<16x48xbf16>
    %cst_11 = arith.constant 0.000000e+00 : bf16
    %18 = vector.broadcast %cst_11 : bf16 to vector<16x48xbf16>
    %19 = arith.cmpf ogt, %17, %18 : vector<16x48xbf16>
    %cst_12 = arith.constant 2.001950e-01 : bf16
    %20 = vector.broadcast %cst_12 : bf16 to vector<16x48xbf16>
    %21 = arith.mulf %20, %17 : vector<16x48xbf16>
    %22 = arith.select %19, %17, %21 : vector<16x48xi1>, vector<16x48xbf16>
    %cst_13 = arith.constant dense<0xFF80> : vector<16xbf16>
    %23 = vector.multi_reduction <maximumf>, %22, %cst_13 [1] : vector<16x48xbf16> to vector<16xbf16>
    %24 = vector.shape_cast %23 : vector<16xbf16> to vector<16x1xbf16>
    %25 = vector.broadcast %24 : vector<16x1xbf16> to vector<16x48xbf16>
    %26 = arith.subf %22, %25 : vector<16x48xbf16>
    %27 = math.exp %26 : vector<16x48xbf16>
    %c0_14 = arith.constant 0 : index
    %c0_15 = arith.constant 0 : index
    %28 = vector.load %arg3[%c0_14, %c0_15] : memref<16x48xbf16, #tpu.memory_space<vmem>>, vector<16x48xbf16>
    %29 = arith.mulf %27, %28 : vector<16x48xbf16>
    %30 = arith.extf %29 : vector<16x48xbf16> to vector<16x48xf32>
    %cst_16 = arith.constant dense<0.000000e+00> : vector<16xf32>
    %31 = vector.multi_reduction <add>, %30, %cst_16 [1] : vector<16x48xf32> to vector<16xf32>
    %32 = vector.shape_cast %31 : vector<16xf32> to vector<16x1xf32>
    %cst_17 = arith.constant 9.99999968E-21 : f32
    %33 = vector.broadcast %cst_17 : f32 to vector<16x1xf32>
    %34 = arith.maximumf %32, %33 : vector<16x1xf32>
    %35 = tpu.reciprocal %34 {approx = true} : vector<16x1xf32> -> vector<16x1xf32>
    %36 = arith.truncf %35 : vector<16x1xf32> to vector<16x1xbf16>
    %37 = vector.broadcast %36 : vector<16x1xbf16> to vector<16x48xbf16>
    %38 = arith.mulf %29, %37 : vector<16x48xbf16>
    %39 = arith.truncf %6 : vector<48x4xf32> to vector<48x4xbf16>
    %cst_18 = arith.constant dense<0.000000e+00> : vector<16x4xf32>
    %40 = tpu.matmul %38, %39, %cst_18 {dimension_numbers = #tpu.dot_dimension_numbers<[1], [0], [0], [1], [0, 0, 1, 1], [], []>} : vector<16x48xbf16>, vector<48x4xbf16>, vector<16x4xf32> -> vector<16x4xf32>
    %cst_19 = arith.constant 1.000000e+00 : f32
    %41 = vector.broadcast %cst_19 : f32 to vector<16x4xf32>
    %42 = arith.mulf %40, %41 : vector<16x4xf32>
    %c0_20 = arith.constant 0 : index
    %c0_21 = arith.constant 0 : index
    %43 = vector.load %arg7[%c0_20, %c0_21] : memref<1x4xf32, #tpu.memory_space<vmem>>, vector<1x4xf32>
    %44 = vector.broadcast %43 : vector<1x4xf32> to vector<16x4xf32>
    %45 = arith.addf %42, %44 : vector<16x4xf32>
    %cst_22 = arith.constant 0.000000e+00 : f32
    %46 = vector.broadcast %cst_22 : f32 to vector<16x4xf32>
    %47 = arith.cmpf ogt, %45, %46 : vector<16x4xf32>
    %cst_23 = arith.constant 0.000000e+00 : f32
    %48 = vector.broadcast %cst_23 : f32 to vector<16x4xf32>
    %49 = arith.minimumf %45, %48 : vector<16x4xf32>
    %50 = math.exp %49 : vector<16x4xf32>
    %cst_24 = arith.constant 1.000000e+00 : f32
    %51 = vector.broadcast %cst_24 : f32 to vector<16x4xf32>
    %52 = arith.subf %50, %51 : vector<16x4xf32>
    %53 = arith.select %47, %45, %52 : vector<16x4xi1>, vector<16x4xf32>
    %c0_25 = arith.constant 0 : index
    %c0_26 = arith.constant 0 : index
    %54 = vector.load %arg8[%c0_25, %c0_26] : memref<16x4xf32, #tpu.memory_space<vmem>>, vector<16x4xf32>
    tpu.vector_store %arg8[%c0_25, %c0_26], %53 {strides = array<i32>} : memref<16x4xf32, #tpu.memory_space<vmem>>, vector<16x4xf32>,
    return
  }
  func.func @transform_0(%arg0: i32) -> (i32, i32) {
    %c0_i32 = arith.constant 0 : i32
    %c0_i32_0 = arith.constant 0 : i32
    %c0_i32_1 = arith.constant 0 : i32
    return %c0_i32, %c0_i32_0 : i32, i32
  }
  func.func @transform_1(%arg0: i32) -> (i32, i32) {
    %c0_i32 = arith.constant 0 : i32
    %c0_i32_0 = arith.constant 0 : i32
    return %arg0, %c0_i32 : i32, i32
  }
  func.func @transform_2(%arg0: i32) -> (i32, i32) {
    %c0_i32 = arith.constant 0 : i32
    %c0_i32_0 = arith.constant 0 : i32
    return %arg0, %c0_i32 : i32, i32
  }
  func.func @transform_3(%arg0: i32) -> (i32, i32) {
    %c0_i32 = arith.constant 0 : i32
    %c0_i32_0 = arith.constant 0 : i32
    %c0_i32_1 = arith.constant 0 : i32
    return %c0_i32, %c0_i32_0 : i32, i32
  }
  func.func @transform_4(%arg0: i32) -> (i32, i32) {
    %c0_i32 = arith.constant 0 : i32
    %c0_i32_0 = arith.constant 0 : i32
    %c0_i32_1 = arith.constant 0 : i32
    return %c0_i32, %c0_i32_0 : i32, i32
  }
  func.func @transform_5(%arg0: i32) -> (i32, i32) {
    %c0_i32 = arith.constant 0 : i32
    %c0_i32_0 = arith.constant 0 : i32
    %c0_i32_1 = arith.constant 0 : i32
    return %c0_i32, %c0_i32_0 : i32, i32
  }
  func.func @transform_6(%arg0: i32) -> (i32, i32) {
    %c0_i32 = arith.constant 0 : i32
    %c0_i32_0 = arith.constant 0 : i32
    %c0_i32_1 = arith.constant 0 : i32
    return %c0_i32, %c0_i32_0 : i32, i32
  }
  func.func @transform_7(%arg0: i32) -> (i32, i32) {
    %c0_i32 = arith.constant 0 : i32
    %c0_i32_0 = arith.constant 0 : i32
    return %arg0, %c0_i32 : i32, i32
  }
}

module attributes {stable_mosaic.version = 11 : i64} {
  func.func @_gat_layer_kernel(%arg0: i32, %arg1: memref<48x4xf32, #tpu.memory_space<vmem>>, %arg2: memref<16x4xf32, #tpu.memory_space<vmem>>, %arg3: memref<16x48xbf16, #tpu.memory_space<vmem>>, %arg4: memref<4x4xf32, #tpu.memory_space<vmem>>, %arg5: memref<1x4xf32, #tpu.memory_space<vmem>>, %arg6: memref<4x1xf32, #tpu.memory_space<vmem>>, %arg7: memref<1x4xf32, #tpu.memory_space<vmem>>, %arg8: memref<16x4xf32, #tpu.memory_space<vmem>>) attributes {dimension_semantics = [#tpu.dimension_semantics<parallel>], iteration_bounds = array<i64: 3>, scalar_prefetch = 0 : i64, scratch_operands = 0 : i64, tpu.core_type = #tpu.core_type<tc>, window_params = [{pipeline_mode = #tpu.pipeline_mode<synchronous>, transform_indices = @transform_0, window_bounds = array<i64: 48, 4>}, {transform_indices = @transform_1, window_bounds = array<i64: 16, 4>}, {transform_indices = @transform_2, window_bounds = array<i64: 16, 48>}, {pipeline_mode = #tpu.pipeline_mode<synchronous>, transform_indices = @transform_3, window_bounds = array<i64: 4, 4>}, {pipeline_mode = #tpu.pipeline_mode<synchronous>, transform_indices = @transform_4, window_bounds = array<i64: 1, 4>}, {pipeline_mode = #tpu.pipeline_mode<synchronous>, transform_indices = @transform_5, window_bounds = array<i64: 4, 1>}, {pipeline_mode = #tpu.pipeline_mode<synchronous>, transform_indices = @transform_6, window_bounds = array<i64: 1, 4>}, {transform_indices = @transform_7, window_bounds = array<i64: 16, 4>}]} {
    %c0 = arith.constant 0 : index
    %c0_0 = arith.constant 0 : index
    %0 = vector.load %arg1[%c0, %c0_0] : memref<48x4xf32, #tpu.memory_space<vmem>>, vector<48x4xf32>
    %1 = arith.truncf %0 : vector<48x4xf32> to vector<48x4xbf16>
    %c0_1 = arith.constant 0 : index
    %c0_2 = arith.constant 0 : index
    %2 = vector.load %arg2[%c0_1, %c0_2] : memref<16x4xf32, #tpu.memory_space<vmem>>, vector<16x4xf32>
    %3 = arith.truncf %2 : vector<16x4xf32> to vector<16x4xbf16>
    %c0_3 = arith.constant 0 : index
    %c0_4 = arith.constant 0 : index
    %4 = vector.load %arg4[%c0_3, %c0_4] : memref<4x4xf32, #tpu.memory_space<vmem>>, vector<4x4xf32>
    %5 = arith.truncf %4 : vector<4x4xf32> to vector<4x4xbf16>
    %cst = arith.constant dense<0.000000e+00> : vector<48x4xf32>
    %6 = tpu.matmul %1, %5, %cst {dimension_numbers = #tpu.dot_dimension_numbers<[1], [0], [0], [1], [0, 0, 1, 1], [], []>} : vector<48x4xbf16>, vector<4x4xbf16>, vector<48x4xf32> -> vector<48x4xf32>
    %c0_5 = arith.constant 0 : index
    %c0_6 = arith.constant 0 : index
    %7 = vector.load %arg5[%c0_5, %c0_6] : memref<1x4xf32, #tpu.memory_space<vmem>>, vector<1x4xf32>
    %8 = arith.truncf %7 : vector<1x4xf32> to vector<1x4xbf16>
    %cst_7 = arith.constant dense<0.000000e+00> : vector<1x48xf32>
    %9 = tpu.matmul %8, %1, %cst_7 {dimension_numbers = #tpu.dot_dimension_numbers<[1], [1], [0], [0], [0, 0, 1, 0], [], []>} : vector<1x4xbf16>, vector<48x4xbf16>, vector<1x48xf32> -> vector<1x48xf32>
    %c0_8 = arith.constant 0 : index
    %c0_9 = arith.constant 0 : index
    %10 = vector.load %arg6[%c0_8, %c0_9] : memref<4x1xf32, #tpu.memory_space<vmem>>, vector<4x1xf32>
    %11 = arith.truncf %10 : vector<4x1xf32> to vector<4x1xbf16>
    %cst_10 = arith.constant dense<0.000000e+00> : vector<16x1xf32>
    %12 = tpu.matmul %3, %11, %cst_10 {dimension_numbers = #tpu.dot_dimension_numbers<[1], [0], [0], [1], [0, 0, 1, 1], [], []>} : vector<16x4xbf16>, vector<4x1xbf16>, vector<16x1xf32> -> vector<16x1xf32>
    %13 = arith.truncf %12 : vector<16x1xf32> to vector<16x1xbf16>
    %14 = arith.truncf %9 : vector<1x48xf32> to vector<1x48xbf16>
    %15 = vector.broadcast %13 : vector<16x1xbf16> to vector<16x48xbf16>
    %16 = vector.broadcast %14 : vector<1x48xbf16> to vector<16x48xbf16>
    %17 = arith.addf %15, %16 : vector<16x48xbf16>
    %cst_11 = arith.constant 0.000000e+00 : bf16
    %18 = vector.broadcast %cst_11 : bf16 to vector<16x48xbf16>
    %19 = arith.cmpf ogt, %17, %18 : vector<16x48xbf16>
    %cst_12 = arith.constant 2.001950e-01 : bf16
    %20 = vector.broadcast %cst_12 : bf16 to vector<16x48xbf16>
    %21 = arith.mulf %20, %17 : vector<16x48xbf16>
    %22 = arith.select %19, %17, %21 : vector<16x48xi1>, vector<16x48xbf16>
    %cst_13 = arith.constant dense<0xFF80> : vector<16xbf16>
    %23 = vector.multi_reduction <maximumf>, %22, %cst_13 [1] : vector<16x48xbf16> to vector<16xbf16>
    %24 = vector.shape_cast %23 : vector<16xbf16> to vector<16x1xbf16>
    %25 = vector.broadcast %24 : vector<16x1xbf16> to vector<16x48xbf16>
    %26 = arith.subf %22, %25 : vector<16x48xbf16>
    %27 = math.exp %26 : vector<16x48xbf16>
    %c0_14 = arith.constant 0 : index
    %c0_15 = arith.constant 0 : index
    %28 = vector.load %arg3[%c0_14, %c0_15] : memref<16x48xbf16, #tpu.memory_space<vmem>>, vector<16x48xbf16>
    %29 = arith.mulf %27, %28 : vector<16x48xbf16>
    %30 = arith.extf %29 : vector<16x48xbf16> to vector<16x48xf32>
    %cst_16 = arith.constant dense<0.000000e+00> : vector<16xf32>
    %31 = vector.multi_reduction <add>, %30, %cst_16 [1] : vector<16x48xf32> to vector<16xf32>
    %32 = vector.shape_cast %31 : vector<16xf32> to vector<16x1xf32>
    %cst_17 = arith.constant 9.99999968E-21 : f32
    %33 = vector.broadcast %cst_17 : f32 to vector<16x1xf32>
    %34 = arith.maximumf %32, %33 : vector<16x1xf32>
    %35 = tpu.reciprocal %34 {approx = true} : vector<16x1xf32> -> vector<16x1xf32>
    %36 = arith.truncf %35 : vector<16x1xf32> to vector<16x1xbf16>
    %37 = vector.broadcast %36 : vector<16x1xbf16> to vector<16x48xbf16>
    %38 = arith.mulf %29, %37 : vector<16x48xbf16>
    %39 = arith.truncf %6 : vector<48x4xf32> to vector<48x4xbf16>
    %cst_18 = arith.constant dense<0.000000e+00> : vector<16x4xf32>
    %40 = tpu.matmul %38, %39, %cst_18 {dimension_numbers = #tpu.dot_dimension_numbers<[1], [0], [0], [1], [0, 0, 1, 1], [], []>} : vector<16x48xbf16>, vector<48x4xbf16>, vector<16x4xf32> -> vector<16x4xf32>
    %cst_19 = arith.constant 1.000000e+00 : f32
    %41 = vector.broadcast %cst_19 : f32 to vector<16x4xf32>
    %42 = arith.mulf %40, %41 : vector<16x4xf32>
    %c0_20 = arith.constant 0 : index
    %c0_21 = arith.constant 0 : index
    %43 = vector.load %arg7[%c0_20, %c0_21] : memref<1x4xf32, #tpu.memory_space<vmem>>, vector<1x4xf32>
    %44 = vector.broadcast %43 : vector<1x4xf32> to vector<16x4xf32>
    %45 = arith.addf %42, %44 : vector<16x4xf32>
    %cst_22 = arith.constant dense<0xFF800000> : vector<16xf32>
    %46 = vector.multi_reduction <maximumf>, %45, %cst_22 [1] : vector<16x4xf32> to vector<16xf32>
    %47 = vector.shape_cast %46 : vector<16xf32> to vector<16x1xf32>
    %48 = vector.broadcast %47 : vector<16x1xf32> to vector<16x4xf32>
    %49 = arith.subf %45, %48 : vector<16x4xf32>
    %50 = math.exp %49 : vector<16x4xf32>
    %cst_23 = arith.constant dense<0.000000e+00> : vector<16xf32>
    %51 = vector.multi_reduction <add>, %50, %cst_23 [1] : vector<16x4xf32> to vector<16xf32>
    %52 = vector.shape_cast %51 : vector<16xf32> to vector<16x1xf32>
    %53 = math.log %52 : vector<16x1xf32>
    %54 = vector.broadcast %53 : vector<16x1xf32> to vector<16x4xf32>
    %55 = arith.subf %49, %54 : vector<16x4xf32>
    %c0_24 = arith.constant 0 : index
    %c0_25 = arith.constant 0 : index
    %56 = vector.load %arg8[%c0_24, %c0_25] : memref<16x4xf32, #tpu.memory_space<vmem>>, vector<16x4xf32>
    tpu.vector_store %arg8[%c0_24, %c0_25], %55 {strides = array<i32>} : memref<16x4xf32, #tpu.memory_space<vmem>>, vector<16x4xf32>,
    return
  }
  func.func @transform_0(%arg0: i32) -> (i32, i32) {
    %c0_i32 = arith.constant 0 : i32
    %c0_i32_0 = arith.constant 0 : i32
    %c0_i32_1 = arith.constant 0 : i32
    return %c0_i32, %c0_i32_0 : i32, i32
  }
  func.func @transform_1(%arg0: i32) -> (i32, i32) {
    %c0_i32 = arith.constant 0 : i32
    %c0_i32_0 = arith.constant 0 : i32
    return %arg0, %c0_i32 : i32, i32
  }
  func.func @transform_2(%arg0: i32) -> (i32, i32) {
    %c0_i32 = arith.constant 0 : i32
    %c0_i32_0 = arith.constant 0 : i32
    return %arg0, %c0_i32 : i32, i32
  }
  func.func @transform_3(%arg0: i32) -> (i32, i32) {
    %c0_i32 = arith.constant 0 : i32
    %c0_i32_0 = arith.constant 0 : i32
    %c0_i32_1 = arith.constant 0 : i32
    return %c0_i32, %c0_i32_0 : i32, i32
  }
  func.func @transform_4(%arg0: i32) -> (i32, i32) {
    %c0_i32 = arith.constant 0 : i32
    %c0_i32_0 = arith.constant 0 : i32
    %c0_i32_1 = arith.constant 0 : i32
    return %c0_i32, %c0_i32_0 : i32, i32
  }
  func.func @transform_5(%arg0: i32) -> (i32, i32) {
    %c0_i32 = arith.constant 0 : i32
    %c0_i32_0 = arith.constant 0 : i32
    %c0_i32_1 = arith.constant 0 : i32
    return %c0_i32, %c0_i32_0 : i32, i32
  }
  func.func @transform_6(%arg0: i32) -> (i32, i32) {
    %c0_i32 = arith.constant 0 : i32
    %c0_i32_0 = arith.constant 0 : i32
    %c0_i32_1 = arith.constant 0 : i32
    return %c0_i32, %c0_i32_0 : i32, i32
  }
  func.func @transform_7(%arg0: i32) -> (i32, i32) {
    %c0_i32 = arith.constant 0 : i32
    %c0_i32_0 = arith.constant 0 : i32
    return %arg0, %c0_i32 : i32, i32
  }
}

</mosaic_0001>

<bundles_post_ra>
// kernel: gat_net_forward.7
= control target key start
LH: loop header
LB: loop body
LE: loop exit
PB: predicated region body
PF: predicated region fallthrough
CT: control target
= control target key end

     0   :  { %s839_s24 = smov 0   ;;  %s939_s0 = inlined_call_operand.vmem [shape: f32[48,4], index: 0, kind: input, shape index: {}, may-alias: {0,1}]   ;;  %s940_s1 = inlined_call_operand.vmem [shape: f32[48,4], index: 1, kind: input, shape index: {}, may-alias: {0,1}]   ;;  %s941_s2 = inlined_call_operand.vmem [shape: bf16[48,48], index: 2, kind: input, shape index: {}]   ;;  %s942_s3 = inlined_call_operand.vmem [shape: f32[4,4], index: 3, kind: input, shape index: {}]   ;;  %s943_s4 = inlined_call_operand.vmem [shape: f32[1,4], index: 4, kind: input, shape index: {}]   ;;  %s944_s5 = inlined_call_operand.vmem [shape: f32[4,1], index: 5, kind: input, shape index: {}]   ;;  %s945_s6 = inlined_call_operand.vmem [shape: f32[1,4], index: 6, kind: input, shape index: {}]   ;;  %s946_s7 = inlined_call_operand.vmem [shape: f32[48,4], index: 7, kind: output, shape index: {}]  }
   0x1 LB: > { %s686_s25 = sadd.s32 4294967295, %s794_s24   ;;  %p690_p0 = scmp.ge.s32.totalorder %s794_s24, 1  ;;  %s794_s24 = sphi %s839_s24, %s17_s24  }
   0x2   : > { %p249_p1 = scmp.lt.s32.totalorder %s794_s24, 4 }
   0x4   : > { %p250_p2 = pnand %p690_p0, %p249_p1 }
   0x5   : > { %s691_s19 = sshll.u32 (!%p250_p2), %s686_s25, 1 }
   0x6   : > { %253 = sbr.rel (%p250_p2) target bundleno = 1213 (0x4bd), region = 48  ;;  %p287_p3 = scmp.lt.s32.totalorder (!%p250_p2), %s691_s19, 5 }
   0xb   : > { %v319_v0 = vld [vmem:[%s942_s3] sm:$0xf]  ;;  %vm331_vm0 = vcmask 1041408   ;;  %v796_v2 = vmov 0.0   ;;  %v308_v6 = vld [vmem:[%s939_s0 + $0x8] sm:$0xff]  ;;  %vm797_vm1 = vmmov 0   ;;  %v496_v49 = vlaneseq }
   0xc   : > { %v437_v1 = vld [vmem:[%s944_s5] sm:$0xf]  ;;  %721 = vmatprep.subr.bf16.mxu0 %v796_v2  ;;  %v320_v3 = vpack.c.bf16 %v319_v0, %v319_v0  ;;  %735 = vmatprep.subr.bf16.mxu1 %v796_v2  ;;  %v312_v8 = vld [vmem:[%s939_s0 + $0x28] sm:$0xff]  ;;  %vm321_vm2 = vcmask 31744   ;;  %v309_v14 = vld [vmem:[%s939_s0 + $0x10] sm:$0xff]  ;;  %s948_s19 = smov (!%p287_p3, %s691_s19), 5 }
   0xd   : > { %v438_v4 = vpack.c.bf16 %v437_v1, %v437_v1  ;;  %v307_v5 = vld [vmem:[%s939_s0] sm:$0xff]  ;;  %723 = vmatprep.mubr.msk.bf16.mxu0 %vm797_vm1, %v796_v2  ;;  %741 = vmatprep.mubr.msk.bf16.mxu1 %vm797_vm1, %v796_v2  ;;  %v310_v15 = vld [vmem:[%s939_s0 + $0x18] sm:$0xff]  ;;  %s692_s20 = sshll.u32 %s948_s19, 3  ;;  %v798_v24 = vmov 0   ;;  %v497_v51 = vshrl.u32 %v496_v49, 7  ;;  %vm504_vm4 = vcmask 392192  }
   0xe   : > { %v311_v7 = vld [vmem:[%s939_s0 + $0x20] sm:$0xff]  ;;  %v333_v9 = vsel %vm331_vm0, %v320_v3, 0  ;;  %v313_v10 = vpack.c.bf16 %v308_v6, %v307_v5  ;;  %v314_v16 = vpack.c.bf16 %v310_v15, %v309_v14  ;;  %s290_s23 = scalar_lea.vmem %s940_s1, %s692_s20  ;;  %772 = vset.pattern.permute.xlu0 %v798_v24  ;;  %s694_s27 = sshll.u32 %s948_s19, 2 }
   0xf   : > { %v315_v11 = vpack.c.bf16 %v312_v8, %v311_v7  ;;  %722 = vmatpush3.bf16.msra.mxu0 %v333_v9  ;;  %v443_v12 = vsel %vm331_vm0, %v438_v4, 0  ;;  %v392_v19 = vld [vmem:[%s943_s4] sm:$0x1]  ;;  %v317_v21 = vld [vmem:[%s290_s23 + $0x8] sm:$0xff]  ;;  %v498_v53 = vsub.s32 0, %v497_v51  ;;  %s296_s30 = scalar_lea.vmem %s941_s2, %s694_s27  ;;  %s302_s12 = scalar_lea.vmem %s946_s7, %s692_s20 }
  0x10   : > { %745 = vmatprep.subr.bf16.mxu0 %v796_v2  ;;  %v326_v17 = vsel %vm321_vm2, %v314_v16, 0  ;;  %v323_v18 = vsel %vm321_vm2, %v313_v10, 0  ;;  %v316_v20 = vld [vmem:[%s290_s23] sm:$0xff]  ;;  %v393_v22 = vpack.c.bf16 %v392_v19, %v392_v19 }
  0x11   : > { %v329_v13 = vsel %vm321_vm2, %v315_v11, 0  ;;  %v318_v23 = vpack.c.bf16 %v317_v21, %v316_v20  ;;  %v773_v63 = vld [vmem:[%s296_s30] sm:$0xff]  }
  0x12   : > { %736 = vmatpush3.bf16.xpose.msra.mxu1 %v329_v13  ;;  %724 = vmatmul.mubr.msk.bf16.vlgmr.msra.gmra.mxu0 %vm321_vm2, %v313_v10  ;;  %v703_v14 = vld [vmem:[%s945_s6] ss:$0 sm:$0xff] }
  0x13   : > { %737 = vmatprep.subr.bf16.mxu1 %v796_v2  ;;  %746 = vmatpush3.bf16.msra.mxu0 %v443_v12 }
  0x14   : > { %727 = vmatprep.mubr.msk.bf16.mxu0 %vm797_vm1, %v796_v2 }
  0x1a   : > { %738 = vmatpush3.bf16.xpose.msra.mxu1 %v326_v17  ;;  %728 = vmatmul.mubr.msk.bf16.gmra.mxu0 %vm321_vm2, %v314_v16 }
  0x1b   : > { %739 = vmatprep.subr.bf16.mxu1 %v796_v2  ;;  %731 = vmatprep.mubr.msk.bf16.mxu0 %vm797_vm1, %v796_v2 }
  0x22   : > { %740 = vmatpush3.bf16.xpose.msra.mxu1 %v323_v18  ;;  %732 = vmatmul.mubr.msk.bf16.gmra.mxu0 %vm321_vm2, %v315_v11 }
  0x23   : > { %751 = vmatprep.subr.bf16.mxu1 %v796_v2  ;;  %747 = vmatprep.mubr.msk.bf16.mxu0 %vm797_vm1, %v796_v2 }
  0x29   : > { %742 = vmatmul.mubr.msk.bf16.vlgmr.msra.gmra.mxu1 %vm321_vm2, %v393_v22 }
  0x2a   : > { %757 = vmatprep.mubr.msk.bf16.mxu1 %vm797_vm1, %v796_v2  ;;  %748 = vmatmul.mubr.msk.bf16.vlgmr.msra.gmra.mxu0 %vm321_vm2, %v318_v23 }
  0xd2   : > { %v369_v25 = vpop.f32.mrf.mxu0 }
  0xd4   : > { %v725_v26 = vpop.f32.mrf.mxu0 }
  0xd6   : > { %v372_v27 = vpop.f32.mrf.mxu0 }
  0xd7   : > { %v538_v46 = vpack.c.bf16 %v372_v27, %v369_v25 }
  0xd8   : > { %v726_v28 = vpop.f32.mrf.mxu0 }
  0xda   : > { %v377_v29 = vpop.f32.mrf.mxu0 }
  0xdc   : > { %v729_v30 = vpop.f32.mrf.mxu0 }
  0xde   : > { %v380_v31 = vpop.f32.mrf.mxu0 }
  0xdf   : > { %v539_v41 = vpack.c.bf16 %v380_v31, %v377_v29 }
  0xe0   : > { %v730_v32 = vpop.f32.mrf.mxu0 }
  0xe2   : > { %v385_v33 = vpop.f32.mrf.mxu0 }
  0xe4   : > { %v733_v34 = vpop.f32.mrf.mxu0 }
  0xe6   : > { %v388_v35 = vpop.f32.mrf.mxu0 }
  0xe7   : > { %v540_v36 = vpack.c.bf16 %v388_v35, %v385_v33 }
  0xe8   : > { %v734_v37 = vpop.f32.mrf.mxu0 }
  0xe9   : > { %v431_v38 = vpop.f32.mrf.mxu1  ;;  %752 = vmatpush3.bf16.msra.mxu1 %v540_v36 }
  0xea   : > { %v479_v39 = vpop.f32.mrf.mxu0  ;;  %753 = vmatprep.subr.bf16.mxu1 %v796_v2  ;;  %v487_v50 = vpack.c.bf16 %v431_v38, %v431_v38 }
  0xeb   : > { %v743_v40 = vpop.f32.mrf.mxu1 }
  0xec   : > { %v749_v42 = vpop.f32.mrf.mxu0  ;;  %v494_v52 = vpack.i.b16 %v487_v50, %v487_v50 }
  0xed   : > { %v434_v43 = vpop.f32.mrf.mxu1  ;;  %754 = vmatpush3.bf16.msra.mxu1 %v539_v41 }
  0xee   : > { %v482_v44 = vpop.f32.mrf.mxu0  ;;  %755 = vmatprep.subr.bf16.mxu1 %v796_v2  ;;  %v499_v54 = vrot.slane %v494_v52, %v498_v53 }
  0xef   : > { %v744_v45 = vpop.f32.mrf.mxu1  ;;  %v486_v47 = vpack.c.bf16 %v482_v44, %v479_v39 }
  0xf0   : > { %v750_v48 = vpop.f32.mrf.mxu0 }
  0xf1   : > { %756 = vmatpush3.bf16.msra.mxu1 %v538_v46  ;;  %490 = vperm.xlu0 %772, %v486_v47  }
 0x16c   : > { %v491_v55 = vpop.permute.xlu0 %490 }
 0x16d   : > { %v500_v56 = vadd.bf16 %v499_v54, %v491_v55 }
 0x16f   : > { %v502_v57 = vmul.bf16 1045249613, %v500_v56  ;;  %vm501_vm3 = vcmp.gt.bf16.partialorder %v500_v56, 0 }
 0x171   : > { %v503_v58 = vsel %vm501_vm3, %v500_v56, %v502_v57 }
 0x172   : > { %v507_v59 = vsel %vm504_vm4, %v503_v58, 4286644096 }
 0x173   : > { %509 = vmax.xlane.bf16.xlu0 %v507_v59 }
 0x200   : > { %v510_v60 = vpop.xlane.xlu0 %509 }
 0x201   : > { %v511_v61 = vsub.bf16 %v503_v58, %v510_v60 }
 0x203   : > { %v513_v62 = vmul.bf16 1069105081, %v511_v61 }
 0x205   : > { %774 = vpow.bf16 %v513_v62 }
 0x213   : > { %v775_v0 = vpop.eup %774 }
 0x214   : > { %v523_v1 = vmul.bf16 %v775_v0, %v773_v63 }
 0x216   : > { %v524_v2 = vunpack.c.l.bf16 %v523_v1  ;;  %v525_v4 = vunpack.c.h.bf16 %v523_v1 }
 0x218   : > { %v526_v3 = vsel %vm504_vm4, %v524_v2, 0.0  ;;  %v529_v5 = vsel %vm504_vm4, %v525_v4, 0.0 }
 0x219   : > { %527 = vadd.xlane.f32.xlu1 %v526_v3 }
 0x21d   : > { %530 = vadd.xlane.f32.xlu1 %v529_v5 }
 0x2a2   : > { %v528_v6 = vpop.xlane.xlu1 %527 }
 0x2a3   : > { %v532_v7 = vmax.f32 %v528_v6, 1e-20 }
 0x2a5   : > { %776 = vrcp.f32 %v532_v7 }
 0x2a6   : > { %v531_v8 = vpop.xlane.xlu1 %530 }
 0x2a7   : > { %v533_v9 = vmax.f32 %v531_v8, 1e-20 }
 0x2a9   : > { %778 = vrcp.f32 %v533_v9 }
 0x2b2   : > { %v777_v10 = vpop.eup %776 }
 0x2b6   : > { %v779_v11 = vpop.eup %778 }
 0x2b7   : > { %v536_v12 = vpack.c.bf16 %v779_v11, %v777_v10 }
 0x2b9   : > { %v537_v13 = vmul.bf16 %v536_v12, %v523_v1 }
 0x2bb   : > { %758 = vmatmul.mubr.msk.bf16.vlgmr.msra.gmra.mxu1 %vm504_vm4, %v537_v13 }
 0x37b   : > { %v585_v15 = vpop.f32.mrf.mxu1 }
 0x37c   : > { %v586_v16 = vadd.f32 %v703_v14, %v585_v15 }
 0x37d   : > { %v759_v17 = vpop.f32.mrf.mxu1 }
 0x37e   : > { %v592_v18 = vsel %vm321_vm2, %v586_v16, -inf }
 0x37f   : > { %593 = vmax.xlane.f32.xlu1 %v592_v18  ;;  %v588_v19 = vpop.f32.mrf.mxu1 }
 0x380   : > { %v589_v20 = vadd.f32 %v703_v14, %v588_v19 }
 0x381   : > { %v760_v21 = vpop.f32.mrf.mxu1 }
 0x382   : > { %v595_v22 = vsel %vm321_vm2, %v589_v20, -inf }
 0x383   : > { %596 = vmax.xlane.f32.xlu1 %v595_v22 }
 0x408   : > { %v594_v23 = vpop.xlane.xlu1 %593 }
 0x409   : > { %v598_v24 = vsub.f32 %v586_v16, %v594_v23 }
 0x40b   : > { %v600_v25 = vmul.f32 1.442695, %v598_v24 }
 0x40c   : > { %v597_v26 = vpop.xlane.xlu1 %596 }
 0x40d   : > { %780 = vpow2.f32 %v600_v25  ;;  %v599_v27 = vsub.f32 %v589_v20, %v597_v26 }
 0x40f   : > { %v602_v28 = vmul.f32 1.442695, %v599_v27 }
 0x411   : > { %782 = vpow2.f32 %v602_v28 }
 0x41a   : > { %v781_v29 = vpop.eup %780 }
 0x41b   : > { %v604_v30 = vsel %vm321_vm2, %v781_v29, 0.0 }
 0x41c   : > { %605 = vadd.xlane.f32.xlu1 %v604_v30 }
 0x41e   : > { %v783_v31 = vpop.eup %782 }
 0x41f   : > { %v607_v32 = vsel %vm321_vm2, %v783_v31, 0.0 }
 0x420   : > { %608 = vadd.xlane.f32.xlu1 %v607_v32 }
 0x4a5   : > { %v606_v33 = vpop.xlane.xlu1 %605 }
 0x4a6   : > { %784 = vlog2.f32 %v606_v33 }
 0x4a9   : > { %v609_v34 = vpop.xlane.xlu1 %608 }
 0x4aa   : > { %786 = vlog2.f32 %v609_v34 }
 0x4b3   : > { %v785_v35 = vpop.eup %784 }
 0x4b4   : > { %v611_v36 = vmul.f32 0.6931472, %v785_v35 }
 0x4b6   : > { %v614_v37 = vsub.f32 %v598_v24, %v611_v36 }
 0x4b7   : > { %v787_v38 = vpop.eup %786 }
 0x4b8   : > { %616 = vst.msk [vmem:[%s302_s12] sm:$0xff] %vm321_vm2, %v614_v37  ;;  %v613_v39 = vmul.f32 0.6931472, %v787_v38 }
 0x4ba   : > { %v615_v40 = vsub.f32 %v599_v27, %v613_v39 }
 0x4bc   : > { %617 = vst.msk [vmem:[%s302_s12 + $0x8] sm:$0xff] %vm321_vm2, %v615_v40 }
 0x4bd PF: > { %s17_s24 = sadd.s32 1, %s794_s24  }
 0x4be   : > { %p14_p4 = scmp.ge.s32.totalorder %s17_s24, 5  }
 0x4c0   :  { %16 = sbr.rel (!%p14_p4) target bundleno = 1 (0x1), region = 81 }

// kernel: gat_net_forward.5
= control target key start
LH: loop header
LB: loop body
LE: loop exit
PB: predicated region body
PF: predicated region fallthrough
CT: control target
= control target key end

     0   :  { %s821_s24 = smov 0   ;;  %s917_s0 = inlined_call_operand.vmem [shape: f32[48,16], index: 0, kind: input, shape index: {}, may-alias: {0,1}]   ;;  %s918_s1 = inlined_call_operand.vmem [shape: f32[48,16], index: 1, kind: input, shape index: {}, may-alias: {0,1}]   ;;  %s919_s2 = inlined_call_operand.vmem [shape: bf16[48,48], index: 2, kind: input, shape index: {}]   ;;  %s920_s3 = inlined_call_operand.vmem [shape: f32[16,4], index: 3, kind: input, shape index: {}]   ;;  %s921_s4 = inlined_call_operand.vmem [shape: f32[1,16], index: 4, kind: input, shape index: {}]   ;;  %s922_s5 = inlined_call_operand.vmem [shape: f32[16,1], index: 5, kind: input, shape index: {}]   ;;  %s923_s6 = inlined_call_operand.vmem [shape: f32[1,4], index: 6, kind: input, shape index: {}]   ;;  %s924_s7 = inlined_call_operand.vmem [shape: f32[48,4], index: 7, kind: output, shape index: {}]  }
   0x1 LB: > { %s670_s25 = sadd.s32 4294967295, %s776_s24   ;;  %p674_p0 = scmp.ge.s32.totalorder %s776_s24, 1  ;;  %s776_s24 = sphi %s821_s24, %s17_s24  }
   0x2   : > { %p249_p1 = scmp.lt.s32.totalorder %s776_s24, 4 }
   0x4   : > { %p250_p2 = pnand %p674_p0, %p249_p1 }
   0x5   : > { %s675_s19 = sshll.u32 (!%p250_p2), %s670_s25, 1 }
   0x6   : > { %253 = sbr.rel (%p250_p2) target bundleno = 919 (0x397), region = 48  ;;  %p287_p3 = scmp.lt.s32.totalorder (!%p250_p2), %s675_s19, 5 }
   0xb   : > { %v319_v0 = vld [vmem:[%s920_s3] sm:$0xff]  ;;  %v320_v1 = vld [vmem:[%s920_s3 + $0x8] sm:$0xff]  ;;  %v778_v3 = vmov 0.0   ;;  %vm779_vm0 = vmmov 0   ;;  %vm322_vm1 = vcmask 130048   ;;  %v309_v14 = vld [vmem:[%s917_s0 + $0x10] sm:$0xff]  ;;  %v491_v49 = vlaneseq }
   0xc   : > { %v307_v2 = vld [vmem:[%s917_s0] sm:$0xff]  ;;  %707 = vmatprep.subr.bf16.mxu0 %v778_v3  ;;  %v321_v4 = vpack.c.bf16 %v320_v1, %v319_v0  ;;  %709 = vmatprep.mubr.msk.bf16.mxu0 %vm779_vm0, %v778_v3  ;;  %v308_v5 = vld [vmem:[%s917_s0 + $0x8] sm:$0xff]  ;;  %v310_v15 = vld [vmem:[%s917_s0 + $0x18] sm:$0xff]  ;;  %s926_s19 = smov (!%p287_p3, %s675_s19), 5  ;;  %v780_v24 = vmov 0   ;;  %vm499_vm3 = vcmask 392192  }
   0xd   : > { %v434_v6 = vld [vmem:[%s922_s5] sm:$0xff]  ;;  %v435_v7 = vld [vmem:[%s922_s5 + $0x8] sm:$0xff]  ;;  %v313_v8 = vpack.c.bf16 %v308_v5, %v307_v2  ;;  %721 = vmatprep.subr.bf16.mxu1 %v778_v3  ;;  %727 = vmatprep.mubr.msk.bf16.mxu1 %vm779_vm0, %v778_v3  ;;  %v314_v16 = vpack.c.bf16 %v310_v15, %v309_v14  ;;  %s676_s25 = sshll.u32 %s926_s19, 3  ;;  %v492_v51 = vshrl.u32 %v491_v49, 7  ;;  %s678_s8 = sshll.u32 %s926_s19, 2  ;;  %vm599_vm4 = vcmask 31744  }
   0xe   : > { %v311_v9 = vld [vmem:[%s917_s0 + $0x20] sm:$0xff]  ;;  %708 = vmatpush3.bf16.msra.mxu0 %v321_v4  ;;  %v436_v10 = vpack.c.bf16 %v435_v7, %v434_v6  ;;  %v312_v11 = vld [vmem:[%s917_s0 + $0x28] sm:$0xff]  ;;  %s290_s28 = scalar_lea.vmem %s918_s1, %s676_s25  ;;  %758 = vset.pattern.permute.xlu0 %v780_v24  ;;  %s296_s11 = scalar_lea.vmem %s919_s2, %s678_s8 }
   0xf   : > { %731 = vmatprep.subr.bf16.mxu0 %v778_v3  ;;  %v315_v12 = vpack.c.bf16 %v312_v11, %v311_v9  ;;  %v327_v17 = vsel %vm322_vm1, %v314_v16, 0  ;;  %v324_v18 = vsel %vm322_vm1, %v313_v8, 0  ;;  %v316_v19 = vld [vmem:[%s290_s28] sm:$0xff]  ;;  %v317_v20 = vld [vmem:[%s290_s28 + $0x8] sm:$0xff]  ;;  %v493_v53 = vsub.s32 0, %v492_v51  ;;  %s302_s16 = scalar_lea.vmem %s924_s7, %s676_s25 }
  0x10   : > { %v389_v21 = vld [vmem:[%s921_s4] sm:$0x1]  ;;  %v318_v22 = vpack.c.bf16 %v317_v20, %v316_v19 }
  0x11   : > { %710 = vmatmul.mubr.msk.bf16.vlgmr.msra.gmra.mxu0 %vm322_vm1, %v313_v8  ;;  %v330_v13 = vsel %vm322_vm1, %v315_v12, 0  ;;  %v390_v23 = vpack.c.bf16 %v389_v21, %v389_v21  ;;  %v759_v63 = vld [vmem:[%s296_s11] sm:$0xff]  }
  0x12   : > { %732 = vmatpush3.bf16.msra.mxu0 %v436_v10  ;;  %713 = vmatprep.mubr.msk.bf16.mxu0 %vm779_vm0, %v778_v3  ;;  %v687_v14 = vld [vmem:[%s923_s6] ss:$0 sm:$0xff] }
  0x13   : > { %722 = vmatpush3.bf16.xpose.msra.mxu1 %v330_v13 }
  0x14   : > { %723 = vmatprep.subr.bf16.mxu1 %v778_v3 }
  0x19   : > { %714 = vmatmul.mubr.msk.bf16.gmra.mxu0 %vm322_vm1, %v314_v16 }
  0x1a   : > { %717 = vmatprep.mubr.msk.bf16.mxu0 %vm779_vm0, %v778_v3 }
  0x1b   : > { %724 = vmatpush3.bf16.xpose.msra.mxu1 %v327_v17 }
  0x1c   : > { %725 = vmatprep.subr.bf16.mxu1 %v778_v3 }
  0x21   : > { %718 = vmatmul.mubr.msk.bf16.gmra.mxu0 %vm322_vm1, %v315_v12 }
  0x22   : > { %733 = vmatprep.mubr.msk.bf16.mxu0 %vm779_vm0, %v778_v3 }
  0x23   : > { %726 = vmatpush3.bf16.xpose.msra.mxu1 %v324_v18 }
  0x24   : > { %737 = vmatprep.subr.bf16.mxu1 %v778_v3 }
  0x29   : > { %734 = vmatmul.mubr.msk.bf16.vlgmr.msra.gmra.mxu0 %vm322_vm1, %v318_v22 }
  0x2a   : > { %728 = vmatmul.mubr.msk.bf16.vlgmr.msra.gmra.mxu1 %vm322_vm1, %v390_v23 }
  0x2b   : > { %743 = vmatprep.mubr.msk.bf16.mxu1 %vm779_vm0, %v778_v3 }
  0xd1   : > { %v366_v25 = vpop.f32.mrf.mxu0 }
  0xd3   : > { %v711_v26 = vpop.f32.mrf.mxu0 }
  0xd5   : > { %v369_v27 = vpop.f32.mrf.mxu0 }
  0xd6   : > { %v533_v44 = vpack.c.bf16 %v369_v27, %v366_v25 }
  0xd7   : > { %v712_v28 = vpop.f32.mrf.mxu0 }
  0xd9   : > { %v374_v29 = vpop.f32.mrf.mxu0 }
  0xdb   : > { %v715_v30 = vpop.f32.mrf.mxu0 }
  0xdd   : > { %v377_v31 = vpop.f32.mrf.mxu0 }
  0xde   : > { %v534_v39 = vpack.c.bf16 %v377_v31, %v374_v29 }
  0xdf   : > { %v716_v32 = vpop.f32.mrf.mxu0 }
  0xe1   : > { %v382_v33 = vpop.f32.mrf.mxu0 }
  0xe3   : > { %v719_v34 = vpop.f32.mrf.mxu0 }
  0xe5   : > { %v385_v35 = vpop.f32.mrf.mxu0 }
  0xe6   : > { %v535_v36 = vpack.c.bf16 %v385_v35, %v382_v33 }
  0xe7   : > { %v720_v37 = vpop.f32.mrf.mxu0 }
  0xe8   : > { %738 = vmatpush3.bf16.msra.mxu1 %v535_v36 }
  0xe9   : > { %v474_v38 = vpop.f32.mrf.mxu0  ;;  %739 = vmatprep.subr.bf16.mxu1 %v778_v3 }
  0xea   : > { %v428_v40 = vpop.f32.mrf.mxu1 }
  0xeb   : > { %v735_v41 = vpop.f32.mrf.mxu0  ;;  %v482_v50 = vpack.c.bf16 %v428_v40, %v428_v40 }
  0xec   : > { %740 = vmatpush3.bf16.msra.mxu1 %v534_v39  ;;  %v729_v42 = vpop.f32.mrf.mxu1 }
  0xed   : > { %v477_v43 = vpop.f32.mrf.mxu0  ;;  %741 = vmatprep.subr.bf16.mxu1 %v778_v3  ;;  %v489_v52 = vpack.i.b16 %v482_v50, %v482_v50 }
  0xee   : > { %v481_v45 = vpack.c.bf16 %v477_v43, %v474_v38  ;;  %v431_v46 = vpop.f32.mrf.mxu1 }
  0xef   : > { %v736_v47 = vpop.f32.mrf.mxu0  ;;  %v494_v54 = vrot.slane %v489_v52, %v493_v53 }
  0xf0   : > { %742 = vmatpush3.bf16.msra.mxu1 %v533_v44  ;;  %485 = vperm.xlu0 %758, %v481_v45   ;;  %v730_v48 = vpop.f32.mrf.mxu1 }
 0x16b   : > { %v486_v55 = vpop.permute.xlu0 %485 }
 0x16c   : > { %v495_v56 = vadd.bf16 %v494_v54, %v486_v55 }
 0x16e   : > { %v497_v57 = vmul.bf16 1045249613, %v495_v56  ;;  %vm496_vm2 = vcmp.gt.bf16.partialorder %v495_v56, 0 }
 0x170   : > { %v498_v58 = vsel %vm496_vm2, %v495_v56, %v497_v57 }
 0x171   : > { %v502_v59 = vsel %vm499_vm3, %v498_v58, 4286644096 }
 0x172   : > { %504 = vmax.xlane.bf16.xlu0 %v502_v59 }
 0x1ff   : > { %v505_v60 = vpop.xlane.xlu0 %504 }
 0x200   : > { %v506_v61 = vsub.bf16 %v498_v58, %v505_v60 }
 0x202   : > { %v508_v62 = vmul.bf16 1069105081, %v506_v61 }
 0x204   : > { %760 = vpow.bf16 %v508_v62 }
 0x212   : > { %v761_v0 = vpop.eup %760 }
 0x213   : > { %v518_v1 = vmul.bf16 %v761_v0, %v759_v63 }
 0x215   : > { %v519_v2 = vunpack.c.l.bf16 %v518_v1  ;;  %v520_v4 = vunpack.c.h.bf16 %v518_v1 }
 0x217   : > { %v521_v3 = vsel %vm499_vm3, %v519_v2, 0.0  ;;  %v524_v5 = vsel %vm499_vm3, %v520_v4, 0.0 }
 0x218   : > { %522 = vadd.xlane.f32.xlu1 %v521_v3 }
 0x21c   : > { %525 = vadd.xlane.f32.xlu1 %v524_v5 }
 0x2a1   : > { %v523_v6 = vpop.xlane.xlu1 %522 }
 0x2a2   : > { %v527_v7 = vmax.f32 %v523_v6, 1e-20 }
 0x2a4   : > { %762 = vrcp.f32 %v527_v7 }
 0x2a5   : > { %v526_v8 = vpop.xlane.xlu1 %525 }
 0x2a6   : > { %v528_v9 = vmax.f32 %v526_v8, 1e-20 }
 0x2a8   : > { %764 = vrcp.f32 %v528_v9 }
 0x2b1   : > { %v763_v10 = vpop.eup %762 }
 0x2b5   : > { %v765_v11 = vpop.eup %764 }
 0x2b6   : > { %v531_v12 = vpack.c.bf16 %v765_v11, %v763_v10 }
 0x2b8   : > { %v532_v13 = vmul.bf16 %v531_v12, %v518_v1 }
 0x2ba   : > { %744 = vmatmul.mubr.msk.bf16.vlgmr.msra.gmra.mxu1 %vm499_vm3, %v532_v13 }
 0x37a   : > { %v580_v15 = vpop.f32.mrf.mxu1 }
 0x37b   : > { %v581_v16 = vadd.f32 %v687_v14, %v580_v15 }
 0x37c   : > { %v745_v17 = vpop.f32.mrf.mxu1 }
 0x37d   : > { %v589_v18 = vmin.f32 %v581_v16, 0.0  ;;  %vm587_vm5 = vcmp.gt.f32.partialorder %v581_v16, 0.0 }
 0x37e   : > { %v583_v19 = vpop.f32.mrf.mxu1 }
 0x37f   : > { %v591_v20 = vmul.f32 1.442695, %v589_v18  ;;  %v584_v21 = vadd.f32 %v687_v14, %v583_v19 }
 0x380   : > { %v746_v22 = vpop.f32.mrf.mxu1 }
 0x381   : > { %766 = vpow2.f32 %v591_v20  ;;  %v590_v23 = vmin.f32 %v584_v21, 0.0  ;;  %vm588_vm6 = vcmp.gt.f32.partialorder %v584_v21, 0.0 }
 0x383   : > { %v593_v24 = vmul.f32 1.442695, %v590_v23 }
 0x385   : > { %768 = vpow2.f32 %v593_v24 }
 0x38e   : > { %v767_v25 = vpop.eup %766 }
 0x38f   : > { %v689_v26 = vadd.f32 -1.0, %v767_v25 }
 0x391   : > { %v597_v27 = vsel %vm587_vm5, %v581_v16, %v689_v26 }
 0x392   : > { %v769_v28 = vpop.eup %768  ;;  %600 = vst.msk [vmem:[%s302_s16] sm:$0xff] %vm599_vm4, %v597_v27 }
 0x393   : > { %v690_v29 = vadd.f32 -1.0, %v769_v28 }
 0x395   : > { %v598_v30 = vsel %vm588_vm6, %v584_v21, %v690_v29 }
 0x396   : > { %601 = vst.msk [vmem:[%s302_s16 + $0x8] sm:$0xff] %vm599_vm4, %v598_v30 }
 0x397 PF: > { %s17_s24 = sadd.s32 1, %s776_s24  }
 0x398   : > { %p14_p4 = scmp.ge.s32.totalorder %s17_s24, 5  }
 0x39a   :  { %16 = sbr.rel (!%p14_p4) target bundleno = 1 (0x1), region = 81 }

// kernel: gat_net_forward.6
= control target key start
LH: loop header
LB: loop body
LE: loop exit
PB: predicated region body
PF: predicated region fallthrough
CT: control target
= control target key end

     0   :  { %s825_s24 = smov 0   ;;  %s921_s0 = inlined_call_operand.vmem [shape: f32[48,4], index: 0, kind: input, shape index: {}, may-alias: {0,1}]   ;;  %s922_s1 = inlined_call_operand.vmem [shape: f32[48,4], index: 1, kind: input, shape index: {}, may-alias: {0,1}]   ;;  %s923_s2 = inlined_call_operand.vmem [shape: bf16[48,48], index: 2, kind: input, shape index: {}]   ;;  %s924_s3 = inlined_call_operand.vmem [shape: f32[4,4], index: 3, kind: input, shape index: {}]   ;;  %s925_s4 = inlined_call_operand.vmem [shape: f32[1,4], index: 4, kind: input, shape index: {}]   ;;  %s926_s5 = inlined_call_operand.vmem [shape: f32[4,1], index: 5, kind: input, shape index: {}]   ;;  %s927_s6 = inlined_call_operand.vmem [shape: f32[1,4], index: 6, kind: input, shape index: {}]   ;;  %s928_s7 = inlined_call_operand.vmem [shape: f32[48,4], index: 7, kind: output, shape index: {}]  }
   0x1 LB: > { %s674_s25 = sadd.s32 4294967295, %s780_s24   ;;  %p678_p0 = scmp.ge.s32.totalorder %s780_s24, 1  ;;  %s780_s24 = sphi %s825_s24, %s17_s24  }
   0x2   : > { %p249_p1 = scmp.lt.s32.totalorder %s780_s24, 4 }
   0x4   : > { %p250_p2 = pnand %p678_p0, %p249_p1 }
   0x5   : > { %s679_s19 = sshll.u32 (!%p250_p2), %s674_s25, 1 }
   0x6   : > { %253 = sbr.rel (%p250_p2) target bundleno = 920 (0x398), region = 48  ;;  %p287_p3 = scmp.lt.s32.totalorder (!%p250_p2), %s679_s19, 5 }
   0xb   : > { %v319_v0 = vld [vmem:[%s924_s3] sm:$0xf]  ;;  %vm331_vm0 = vcmask 1041408   ;;  %v782_v2 = vmov 0.0   ;;  %v308_v6 = vld [vmem:[%s921_s0 + $0x8] sm:$0xff]  ;;  %vm783_vm1 = vmmov 0   ;;  %v496_v49 = vlaneseq }
   0xc   : > { %v437_v1 = vld [vmem:[%s926_s5] sm:$0xf]  ;;  %711 = vmatprep.subr.bf16.mxu0 %v782_v2  ;;  %v320_v3 = vpack.c.bf16 %v319_v0, %v319_v0  ;;  %725 = vmatprep.subr.bf16.mxu1 %v782_v2  ;;  %v312_v8 = vld [vmem:[%s921_s0 + $0x28] sm:$0xff]  ;;  %vm321_vm2 = vcmask 31744   ;;  %v309_v14 = vld [vmem:[%s921_s0 + $0x10] sm:$0xff]  ;;  %s930_s19 = smov (!%p287_p3, %s679_s19), 5 }
   0xd   : > { %v438_v4 = vpack.c.bf16 %v437_v1, %v437_v1  ;;  %v307_v5 = vld [vmem:[%s921_s0] sm:$0xff]  ;;  %713 = vmatprep.mubr.msk.bf16.mxu0 %vm783_vm1, %v782_v2  ;;  %731 = vmatprep.mubr.msk.bf16.mxu1 %vm783_vm1, %v782_v2  ;;  %v310_v15 = vld [vmem:[%s921_s0 + $0x18] sm:$0xff]  ;;  %s680_s20 = sshll.u32 %s930_s19, 3  ;;  %v784_v24 = vmov 0   ;;  %v497_v51 = vshrl.u32 %v496_v49, 7  ;;  %vm504_vm4 = vcmask 392192  }
   0xe   : > { %v311_v7 = vld [vmem:[%s921_s0 + $0x20] sm:$0xff]  ;;  %v333_v9 = vsel %vm331_vm0, %v320_v3, 0  ;;  %v313_v10 = vpack.c.bf16 %v308_v6, %v307_v5  ;;  %v314_v16 = vpack.c.bf16 %v310_v15, %v309_v14  ;;  %s290_s23 = scalar_lea.vmem %s922_s1, %s680_s20  ;;  %762 = vset.pattern.permute.xlu0 %v784_v24  ;;  %s682_s27 = sshll.u32 %s930_s19, 2 }
   0xf   : > { %v315_v11 = vpack.c.bf16 %v312_v8, %v311_v7  ;;  %712 = vmatpush3.bf16.msra.mxu0 %v333_v9  ;;  %v443_v12 = vsel %vm331_vm0, %v438_v4, 0  ;;  %v392_v19 = vld [vmem:[%s925_s4] sm:$0x1]  ;;  %v317_v21 = vld [vmem:[%s290_s23 + $0x8] sm:$0xff]  ;;  %v498_v53 = vsub.s32 0, %v497_v51  ;;  %s296_s30 = scalar_lea.vmem %s923_s2, %s682_s27  ;;  %s302_s12 = scalar_lea.vmem %s928_s7, %s680_s20 }
  0x10   : > { %735 = vmatprep.subr.bf16.mxu0 %v782_v2  ;;  %v326_v17 = vsel %vm321_vm2, %v314_v16, 0  ;;  %v323_v18 = vsel %vm321_vm2, %v313_v10, 0  ;;  %v316_v20 = vld [vmem:[%s290_s23] sm:$0xff]  ;;  %v393_v22 = vpack.c.bf16 %v392_v19, %v392_v19 }
  0x11   : > { %v329_v13 = vsel %vm321_vm2, %v315_v11, 0  ;;  %v318_v23 = vpack.c.bf16 %v317_v21, %v316_v20  ;;  %v763_v63 = vld [vmem:[%s296_s30] sm:$0xff]  }
  0x12   : > { %726 = vmatpush3.bf16.xpose.msra.mxu1 %v329_v13  ;;  %714 = vmatmul.mubr.msk.bf16.vlgmr.msra.gmra.mxu0 %vm321_vm2, %v313_v10  ;;  %v691_v14 = vld [vmem:[%s927_s6] ss:$0 sm:$0xff] }
  0x13   : > { %727 = vmatprep.subr.bf16.mxu1 %v782_v2  ;;  %736 = vmatpush3.bf16.msra.mxu0 %v443_v12 }
  0x14   : > { %717 = vmatprep.mubr.msk.bf16.mxu0 %vm783_vm1, %v782_v2 }
  0x1a   : > { %728 = vmatpush3.bf16.xpose.msra.mxu1 %v326_v17  ;;  %718 = vmatmul.mubr.msk.bf16.gmra.mxu0 %vm321_vm2, %v314_v16 }
  0x1b   : > { %729 = vmatprep.subr.bf16.mxu1 %v782_v2  ;;  %721 = vmatprep.mubr.msk.bf16.mxu0 %vm783_vm1, %v782_v2 }
  0x22   : > { %730 = vmatpush3.bf16.xpose.msra.mxu1 %v323_v18  ;;  %722 = vmatmul.mubr.msk.bf16.gmra.mxu0 %vm321_vm2, %v315_v11 }
  0x23   : > { %741 = vmatprep.subr.bf16.mxu1 %v782_v2  ;;  %737 = vmatprep.mubr.msk.bf16.mxu0 %vm783_vm1, %v782_v2 }
  0x29   : > { %732 = vmatmul.mubr.msk.bf16.vlgmr.msra.gmra.mxu1 %vm321_vm2, %v393_v22 }
  0x2a   : > { %747 = vmatprep.mubr.msk.bf16.mxu1 %vm783_vm1, %v782_v2  ;;  %738 = vmatmul.mubr.msk.bf16.vlgmr.msra.gmra.mxu0 %vm321_vm2, %v318_v23 }
  0xd2   : > { %v369_v25 = vpop.f32.mrf.mxu0 }
  0xd4   : > { %v715_v26 = vpop.f32.mrf.mxu0 }
  0xd6   : > { %v372_v27 = vpop.f32.mrf.mxu0 }
  0xd7   : > { %v538_v46 = vpack.c.bf16 %v372_v27, %v369_v25 }
  0xd8   : > { %v716_v28 = vpop.f32.mrf.mxu0 }
  0xda   : > { %v377_v29 = vpop.f32.mrf.mxu0 }
  0xdc   : > { %v719_v30 = vpop.f32.mrf.mxu0 }
  0xde   : > { %v380_v31 = vpop.f32.mrf.mxu0 }
  0xdf   : > { %v539_v41 = vpack.c.bf16 %v380_v31, %v377_v29 }
  0xe0   : > { %v720_v32 = vpop.f32.mrf.mxu0 }
  0xe2   : > { %v385_v33 = vpop.f32.mrf.mxu0 }
  0xe4   : > { %v723_v34 = vpop.f32.mrf.mxu0 }
  0xe6   : > { %v388_v35 = vpop.f32.mrf.mxu0 }
  0xe7   : > { %v540_v36 = vpack.c.bf16 %v388_v35, %v385_v33 }
  0xe8   : > { %v724_v37 = vpop.f32.mrf.mxu0 }
  0xe9   : > { %v431_v38 = vpop.f32.mrf.mxu1  ;;  %742 = vmatpush3.bf16.msra.mxu1 %v540_v36 }
  0xea   : > { %v479_v39 = vpop.f32.mrf.mxu0  ;;  %743 = vmatprep.subr.bf16.mxu1 %v782_v2  ;;  %v487_v50 = vpack.c.bf16 %v431_v38, %v431_v38 }
  0xeb   : > { %v733_v40 = vpop.f32.mrf.mxu1 }
  0xec   : > { %v739_v42 = vpop.f32.mrf.mxu0  ;;  %v494_v52 = vpack.i.b16 %v487_v50, %v487_v50 }
  0xed   : > { %v434_v43 = vpop.f32.mrf.mxu1  ;;  %744 = vmatpush3.bf16.msra.mxu1 %v539_v41 }
  0xee   : > { %v482_v44 = vpop.f32.mrf.mxu0  ;;  %745 = vmatprep.subr.bf16.mxu1 %v782_v2  ;;  %v499_v54 = vrot.slane %v494_v52, %v498_v53 }
  0xef   : > { %v734_v45 = vpop.f32.mrf.mxu1  ;;  %v486_v47 = vpack.c.bf16 %v482_v44, %v479_v39 }
  0xf0   : > { %v740_v48 = vpop.f32.mrf.mxu0 }
  0xf1   : > { %746 = vmatpush3.bf16.msra.mxu1 %v538_v46  ;;  %490 = vperm.xlu0 %762, %v486_v47  }
 0x16c   : > { %v491_v55 = vpop.permute.xlu0 %490 }
 0x16d   : > { %v500_v56 = vadd.bf16 %v499_v54, %v491_v55 }
 0x16f   : > { %v502_v57 = vmul.bf16 1045249613, %v500_v56  ;;  %vm501_vm3 = vcmp.gt.bf16.partialorder %v500_v56, 0 }
 0x171   : > { %v503_v58 = vsel %vm501_vm3, %v500_v56, %v502_v57 }
 0x172   : > { %v507_v59 = vsel %vm504_vm4, %v503_v58, 4286644096 }
 0x173   : > { %509 = vmax.xlane.bf16.xlu0 %v507_v59 }
 0x200   : > { %v510_v60 = vpop.xlane.xlu0 %509 }
 0x201   : > { %v511_v61 = vsub.bf16 %v503_v58, %v510_v60 }
 0x203   : > { %v513_v62 = vmul.bf16 1069105081, %v511_v61 }
 0x205   : > { %764 = vpow.bf16 %v513_v62 }
 0x213   : > { %v765_v0 = vpop.eup %764 }
 0x214   : > { %v523_v1 = vmul.bf16 %v765_v0, %v763_v63 }
 0x216   : > { %v524_v2 = vunpack.c.l.bf16 %v523_v1  ;;  %v525_v4 = vunpack.c.h.bf16 %v523_v1 }
 0x218   : > { %v526_v3 = vsel %vm504_vm4, %v524_v2, 0.0  ;;  %v529_v5 = vsel %vm504_vm4, %v525_v4, 0.0 }
 0x219   : > { %527 = vadd.xlane.f32.xlu1 %v526_v3 }
 0x21d   : > { %530 = vadd.xlane.f32.xlu1 %v529_v5 }
 0x2a2   : > { %v528_v6 = vpop.xlane.xlu1 %527 }
 0x2a3   : > { %v532_v7 = vmax.f32 %v528_v6, 1e-20 }
 0x2a5   : > { %766 = vrcp.f32 %v532_v7 }
 0x2a6   : > { %v531_v8 = vpop.xlane.xlu1 %530 }
 0x2a7   : > { %v533_v9 = vmax.f32 %v531_v8, 1e-20 }
 0x2a9   : > { %768 = vrcp.f32 %v533_v9 }
 0x2b2   : > { %v767_v10 = vpop.eup %766 }
 0x2b6   : > { %v769_v11 = vpop.eup %768 }
 0x2b7   : > { %v536_v12 = vpack.c.bf16 %v769_v11, %v767_v10 }
 0x2b9   : > { %v537_v13 = vmul.bf16 %v536_v12, %v523_v1 }
 0x2bb   : > { %748 = vmatmul.mubr.msk.bf16.vlgmr.msra.gmra.mxu1 %vm504_vm4, %v537_v13 }
 0x37b   : > { %v585_v15 = vpop.f32.mrf.mxu1 }
 0x37c   : > { %v586_v16 = vadd.f32 %v691_v14, %v585_v15 }
 0x37d   : > { %v749_v17 = vpop.f32.mrf.mxu1 }
 0x37e   : > { %v594_v18 = vmin.f32 %v586_v16, 0.0  ;;  %vm592_vm5 = vcmp.gt.f32.partialorder %v586_v16, 0.0 }
 0x37f   : > { %v588_v19 = vpop.f32.mrf.mxu1 }
 0x380   : > { %v596_v20 = vmul.f32 1.442695, %v594_v18  ;;  %v589_v21 = vadd.f32 %v691_v14, %v588_v19 }
 0x381   : > { %v750_v22 = vpop.f32.mrf.mxu1 }
 0x382   : > { %770 = vpow2.f32 %v596_v20  ;;  %v595_v23 = vmin.f32 %v589_v21, 0.0  ;;  %vm593_vm6 = vcmp.gt.f32.partialorder %v589_v21, 0.0 }
 0x384   : > { %v598_v24 = vmul.f32 1.442695, %v595_v23 }
 0x386   : > { %772 = vpow2.f32 %v598_v24 }
 0x38f   : > { %v771_v25 = vpop.eup %770 }
 0x390   : > { %v693_v26 = vadd.f32 -1.0, %v771_v25 }
 0x392   : > { %v602_v27 = vsel %vm592_vm5, %v586_v16, %v693_v26 }
 0x393   : > { %v773_v28 = vpop.eup %772  ;;  %604 = vst.msk [vmem:[%s302_s12] sm:$0xff] %vm321_vm2, %v602_v27 }
 0x394   : > { %v694_v29 = vadd.f32 -1.0, %v773_v28 }
 0x396   : > { %v603_v30 = vsel %vm593_vm6, %v589_v21, %v694_v29 }
 0x397   : > { %605 = vst.msk [vmem:[%s302_s12 + $0x8] sm:$0xff] %vm321_vm2, %v603_v30 }
 0x398 PF: > { %s17_s24 = sadd.s32 1, %s780_s24  }
 0x399   : > { %p14_p4 = scmp.ge.s32.totalorder %s17_s24, 5  }
 0x39b   :  { %16 = sbr.rel (!%p14_p4) target bundleno = 1 (0x1), region = 81 }

// kernel: gat_net_forward.4
= control target key start
LH: loop header
LB: loop body
LE: loop exit
PB: predicated region body
PF: predicated region fallthrough
CT: control target
= control target key end

     0   :  { %s970_s24 = smov 0   ;;  %s1097_s0 = inlined_call_operand.vmem [shape: f32[48,16], index: 0, kind: input, shape index: {}, may-alias: {0,1}]   ;;  %s1098_s1 = inlined_call_operand.vmem [shape: f32[48,16], index: 1, kind: input, shape index: {}, may-alias: {0,1}]   ;;  %s1099_s2 = inlined_call_operand.vmem [shape: bf16[48,48], index: 2, kind: input, shape index: {}]   ;;  %s1100_s3 = inlined_call_operand.vmem [shape: f32[16,16], index: 3, kind: input, shape index: {}]   ;;  %s1101_s4 = inlined_call_operand.vmem [shape: f32[2,16], index: 4, kind: input, shape index: {}]   ;;  %s1102_s5 = inlined_call_operand.vmem [shape: f32[16,2], index: 5, kind: input, shape index: {}]   ;;  %s1103_s6 = inlined_call_operand.vmem [shape: f32[1,16], index: 6, kind: input, shape index: {}]   ;;  %s1104_s7 = inlined_call_operand.vmem [shape: f32[48,16], index: 7, kind: output, shape index: {}]  }
   0x1 LB: > { %s777_s25 = sadd.s32 4294967295, %s924_s24   ;;  %p781_p0 = scmp.ge.s32.totalorder %s924_s24, 1  ;;  %s924_s24 = sphi %s970_s24, %s17_s24  }
   0x2   : > { %p249_p1 = scmp.lt.s32.totalorder %s924_s24, 4 }
   0x4   : > { %p250_p2 = pnand %p781_p0, %p249_p1 }
   0x5   : > { %s782_s19 = sshll.u32 (!%p250_p2), %s777_s25, 1 }
   0x6   : > { %253 = sbr.rel (%p250_p2) target bundleno = 930 (0x3a2), region = 48  ;;  %p287_p3 = scmp.lt.s32.totalorder (!%p250_p2), %s782_s19, 5 }
   0xb   : > { %v319_v0 = vld [vmem:[%s1100_s3] sm:$0xff]  ;;  %v320_v1 = vld [vmem:[%s1100_s3 + $0x8] sm:$0xff]  ;;  %v926_v3 = vmov 0.0   ;;  %vm927_vm0 = vmmov 0   ;;  %vm322_vm1 = vcmask 130048   ;;  %v309_v14 = vld [vmem:[%s1097_s0 + $0x10] sm:$0xff]  ;;  %v481_v28 = vlaneseq }
   0xc   : > { %v307_v2 = vld [vmem:[%s1097_s0] sm:$0xff]  ;;  %837 = vmatprep.subr.bf16.mxu0 %v926_v3  ;;  %v321_v4 = vpack.c.bf16 %v320_v1, %v319_v0  ;;  %839 = vmatprep.mubr.msk.bf16.mxu0 %vm927_vm0, %v926_v3  ;;  %v308_v5 = vld [vmem:[%s1097_s0 + $0x8] sm:$0xff]  ;;  %v310_v15 = vld [vmem:[%s1097_s0 + $0x18] sm:$0xff]  ;;  %s1110_s19 = smov (!%p287_p3, %s782_s19), 5  ;;  %v928_v24 = vmov 0   ;;  %v929_v61 = vmov 1  }
   0xd   : > { %v434_v6 = vld [vmem:[%s1102_s5] sm:$0xff]  ;;  %v435_v7 = vld [vmem:[%s1102_s5 + $0x8] sm:$0xff]  ;;  %v313_v8 = vpack.c.bf16 %v308_v5, %v307_v2  ;;  %851 = vmatprep.subr.bf16.mxu1 %v926_v3  ;;  %857 = vmatprep.mubr.msk.bf16.mxu1 %vm927_vm0, %v926_v3  ;;  %v314_v16 = vpack.c.bf16 %v310_v15, %v309_v14  ;;  %s783_s25 = sshll.u32 %s1110_s19, 3  ;;  %v482_v31 = vand.u32 127, %v481_v28  ;;  %v503_v42 = vshrl.u32 %v481_v28, 7  ;;  %s785_s8 = sshll.u32 %s1110_s19, 2 }
   0xe   : > { %v311_v9 = vld [vmem:[%s1097_s0 + $0x20] sm:$0xff]  ;;  %838 = vmatpush3.bf16.msra.mxu0 %v321_v4  ;;  %v436_v10 = vpack.c.bf16 %v435_v7, %v434_v6  ;;  %v312_v11 = vld [vmem:[%s1097_s0 + $0x28] sm:$0xff]  ;;  %s290_s28 = scalar_lea.vmem %s1098_s1, %s783_s25  ;;  %899 = vset.pattern.permute.xlu0 %v928_v24  ;;  %vm510_vm9 = vcmask 392192   ;;  %s296_s11 = scalar_lea.vmem %s1099_s2, %s785_s8 }
   0xf   : > { %861 = vmatprep.subr.bf16.mxu0 %v926_v3  ;;  %v315_v12 = vpack.c.bf16 %v312_v11, %v311_v9  ;;  %v327_v17 = vsel %vm322_vm1, %v314_v16, 0  ;;  %v324_v18 = vsel %vm322_vm1, %v313_v8, 0  ;;  %v316_v19 = vld [vmem:[%s290_s28] sm:$0xff]  ;;  %v317_v20 = vld [vmem:[%s290_s28 + $0x8] sm:$0xff]  ;;  %vm547_vm2 = vcmp.ge.s32.totalorder %v482_v31, 8  ;;  %s302_s16 = scalar_lea.vmem %s1104_s7, %s783_s25 }
  0x10   : > { %v389_v21 = vld [vmem:[%s1101_s4] sm:$0x3]  ;;  %v318_v22 = vpack.c.bf16 %v317_v20, %v316_v19  ;;  %vm548_vm3 = vcmp.lt.s32.totalorder %v482_v31, 16  ;;  %vm484_vm5 = vcmp.lt.s32.totalorder %v482_v31, 8  ;;  %v504_v48 = vsub.s32 0, %v503_v42 }
  0x11   : > { %840 = vmatmul.mubr.msk.bf16.vlgmr.msra.gmra.mxu0 %vm322_vm1, %v313_v8  ;;  %v330_v13 = vsel %vm322_vm1, %v315_v12, 0  ;;  %v390_v23 = vpack.c.bf16 %v389_v21, %v389_v21  ;;  %vm549_vm4 = vmand %vm547_vm2, %vm548_vm3  ;;  %v901_v14 = vld [vmem:[%s296_s11] sm:$0xff]  }
  0x12   : > { %862 = vmatpush3.bf16.msra.mxu0 %v436_v10  ;;  %843 = vmatprep.mubr.msk.bf16.mxu0 %vm927_vm0, %v926_v3  ;;  %vm1048_vm6 = vmpackc.low %vm549_vm4, %vm549_vm4 }
  0x13   : > { %852 = vmatpush3.bf16.xpose.msra.mxu1 %v330_v13  ;;  %877 = vmatprep.subr.bf16.mxu0 %v926_v3  ;;  %vm1052_vm7 = vmpackc.low %vm484_vm5, %vm484_vm5 }
  0x14   : > { %853 = vmatprep.subr.bf16.mxu1 %v926_v3 }
  0x19   : > { %844 = vmatmul.mubr.msk.bf16.gmra.mxu0 %vm322_vm1, %v314_v16 }
  0x1a   : > { %847 = vmatprep.mubr.msk.bf16.mxu0 %vm927_vm0, %v926_v3 }
  0x1b   : > { %854 = vmatpush3.bf16.xpose.msra.mxu1 %v327_v17 }
  0x1c   : > { %855 = vmatprep.subr.bf16.mxu1 %v926_v3 }
  0x21   : > { %848 = vmatmul.mubr.msk.bf16.gmra.mxu0 %vm322_vm1, %v315_v12 }
  0x22   : > { %863 = vmatprep.mubr.msk.bf16.mxu0 %vm927_vm0, %v926_v3 }
  0x23   : > { %856 = vmatpush3.bf16.xpose.msra.mxu1 %v324_v18 }
  0x24   : > { %867 = vmatprep.subr.bf16.mxu1 %v926_v3 }
  0x29   : > { %864 = vmatmul.mubr.msk.bf16.vlgmr.msra.gmra.mxu0 %vm322_vm1, %v318_v22 }
  0x2a   : > { %858 = vmatmul.mubr.msk.bf16.vlgmr.msra.gmra.mxu1 %vm322_vm1, %v390_v23  ;;  %883 = vmatprep.mubr.msk.bf16.mxu0 %vm927_vm0, %v926_v3 }
  0x2b   : > { %873 = vmatprep.mubr.msk.bf16.mxu1 %vm927_vm0, %v926_v3 }
  0xd1   : > { %v366_v25 = vpop.f32.mrf.mxu0 }
  0xd3   : > { %v841_v26 = vpop.f32.mrf.mxu0 }
  0xd5   : > { %v369_v27 = vpop.f32.mrf.mxu0 }
  0xd6   : > { %v801_v53 = vpack.c.bf16 %v369_v27, %v366_v25 }
  0xd7   : > { %v842_v29 = vpop.f32.mrf.mxu0 }
  0xd9   : > { %v374_v30 = vpop.f32.mrf.mxu0 }
  0xdb   : > { %v845_v32 = vpop.f32.mrf.mxu0 }
  0xdd   : > { %v377_v33 = vpop.f32.mrf.mxu0 }
  0xde   : > { %v798_v44 = vpack.c.bf16 %v377_v33, %v374_v30 }
  0xdf   : > { %v846_v34 = vpop.f32.mrf.mxu0 }
  0xe1   : > { %v382_v35 = vpop.f32.mrf.mxu0 }
  0xe3   : > { %v849_v36 = vpop.f32.mrf.mxu0 }
  0xe5   : > { %v385_v38 = vpop.f32.mrf.mxu0 }
  0xe6   : > { %v795_v40 = vpack.c.bf16 %v385_v38, %v382_v35 }
  0xe7   : > { %v850_v41 = vpop.f32.mrf.mxu0 }
  0xe8   : > { %868 = vmatpush3.bf16.msk.msra.mxu1 %vm1048_vm6, %v795_v40  ;;  %878 = vmatpush3.bf16.msk.msra.mxu0 %vm1052_vm7, %v795_v40 }
  0xe9   : > { %v474_v43 = vpop.f32.mrf.mxu0  ;;  %869 = vmatprep.subr.bf16.mxu1 %v926_v3  ;;  %879 = vmatprep.subr.bf16.mxu0 %v926_v3 }
  0xea   : > { %v428_v45 = vpop.f32.mrf.mxu1 }
  0xeb   : > { %v865_v46 = vpop.f32.mrf.mxu0  ;;  %v493_v47 = vpack.c.bf16 %v428_v45, %v428_v45 }
  0xec   : > { %870 = vmatpush3.bf16.msk.msra.mxu1 %vm1048_vm6, %v798_v44  ;;  %880 = vmatpush3.bf16.msk.msra.mxu0 %vm1052_vm7, %v798_v44  ;;  %v859_v49 = vpop.f32.mrf.mxu1 }
  0xed   : > { %v477_v50 = vpop.f32.mrf.mxu0  ;;  %871 = vmatprep.subr.bf16.mxu1 %v926_v3  ;;  %881 = vmatprep.subr.bf16.mxu0 %v926_v3  ;;  %v500_v51 = vpack.i.b16 %v493_v47, %v493_v47  ;;  %v560_v52 = vshrl.u32 %v493_v47, 16 }
  0xee   : > { %v492_v54 = vpack.c.bf16 %v477_v50, %v474_v43  ;;  %v431_v55 = vpop.f32.mrf.mxu1 }
  0xef   : > { %v866_v56 = vpop.f32.mrf.mxu0  ;;  %v561_v57 = vpack.i.b16 %v560_v52, %v560_v52  ;;  %v505_v58 = vrot.slane %v500_v51, %v504_v48 }
  0xf0   : > { %872 = vmatpush3.bf16.msk.msra.mxu1 %vm1048_vm6, %v801_v53  ;;  %882 = vmatpush3.bf16.msk.msra.mxu0 %vm1052_vm7, %v801_v53  ;;  %v860_v59 = vpop.f32.mrf.mxu1 }
  0xf1   : > { %496 = vperm.xlu0 %899, %v492_v54   ;;  %v566_v60 = vrot.slane %v561_v57, %v504_v48  ;;  %v814_v48 = vld [vmem:[%s1103_s6] ss:$0 sm:$0xff] }
  0xf5   : > { %900 = vset.pattern.permute.xlu0 %v929_v61 }
  0xf6   : > { %557 = vperm.xlu0 %900, %v492_v54  }
 0x16c   : > { %v497_v62 = vpop.permute.xlu0 %496 }
 0x16d   : > { %v506_v63 = vadd.bf16 %v505_v58, %v497_v62 }
 0x16f   : > { %v508_v0 = vmul.bf16 1045249613, %v506_v63  ;;  %vm507_vm8 = vcmp.gt.bf16.partialorder %v506_v63, 0 }
 0x171   : > { %v558_v1 = vpop.permute.xlu0 %557  ;;  %v509_v2 = vsel %vm507_vm8, %v506_v63, %v508_v0 }
 0x172   : > { %v567_v3 = vadd.bf16 %v566_v60, %v558_v1  ;;  %v513_v4 = vsel %vm510_vm9, %v509_v2, 4286644096 }
 0x173   : > { %515 = vmax.xlane.bf16.xlu1 %v513_v4 }
 0x174   : > { %v569_v5 = vmul.bf16 1045249613, %v567_v3  ;;  %vm568_vm10 = vcmp.gt.bf16.partialorder %v567_v3, 0 }
 0x176   : > { %v570_v6 = vsel %vm568_vm10, %v567_v3, %v569_v5 }
 0x177   : > { %v572_v7 = vsel %vm510_vm9, %v570_v6, 4286644096 }
 0x17b   : > { %574 = vmax.xlane.bf16.xlu1 %v572_v7 }
 0x200   : > { %v516_v8 = vpop.xlane.xlu1 %515 }
 0x201   : > { %v517_v9 = vsub.bf16 %v509_v2, %v516_v8 }
 0x203   : > { %v519_v10 = vmul.bf16 1069105081, %v517_v9 }
 0x205   : > { %902 = vpow.bf16 %v519_v10 }
 0x208   : > { %v575_v11 = vpop.xlane.xlu1 %574 }
 0x209   : > { %v576_v12 = vsub.bf16 %v570_v6, %v575_v11 }
 0x20b   : > { %v578_v13 = vmul.bf16 1069105081, %v576_v12 }
 0x20d   : > { %904 = vpow.bf16 %v578_v13 }
 0x213   : > { %v903_v15 = vpop.eup %902 }
 0x214   : > { %v529_v16 = vmul.bf16 %v903_v15, %v901_v14 }
 0x216   : > { %v530_v17 = vunpack.c.l.bf16 %v529_v16  ;;  %v531_v18 = vunpack.c.h.bf16 %v529_v16 }
 0x218   : > { %v532_v19 = vsel %vm510_vm9, %v530_v17, 0.0  ;;  %v535_v20 = vsel %vm510_vm9, %v531_v18, 0.0 }
 0x219   : > { %533 = vadd.xlane.f32.xlu0 %v532_v19  ;;  %536 = vadd.xlane.f32.xlu1 %v535_v20 }
 0x21b   : > { %v905_v21 = vpop.eup %904 }
 0x21c   : > { %v580_v22 = vmul.bf16 %v905_v21, %v901_v14 }
 0x21e   : > { %v581_v23 = vunpack.c.l.bf16 %v580_v22  ;;  %v582_v25 = vunpack.c.h.bf16 %v580_v22 }
 0x220   : > { %v583_v24 = vsel %vm510_vm9, %v581_v23, 0.0  ;;  %v586_v26 = vsel %vm510_vm9, %v582_v25, 0.0 }
 0x221   : > { %584 = vadd.xlane.f32.xlu1 %v583_v24 }
 0x225   : > { %587 = vadd.xlane.f32.xlu1 %v586_v26 }
 0x2a2   : > { %v537_v27 = vpop.xlane.xlu1 %536  ;;  %v534_v28 = vpop.xlane.xlu0 %533 }
 0x2a3   : > { %v539_v29 = vmax.f32 %v537_v27, 1e-20  ;;  %v538_v30 = vmax.f32 %v534_v28, 1e-20 }
 0x2a5   : > { %906 = vrcp.f32 %v539_v29 }
 0x2a6   : > { %908 = vrcp.f32 %v538_v30 }
 0x2aa   : > { %v585_v31 = vpop.xlane.xlu1 %584 }
 0x2ab   : > { %v589_v32 = vmax.f32 %v585_v31, 1e-20 }
 0x2ad   : > { %910 = vrcp.f32 %v589_v32 }
 0x2ae   : > { %v588_v33 = vpop.xlane.xlu1 %587 }
 0x2af   : > { %v590_v34 = vmax.f32 %v588_v33, 1e-20 }
 0x2b1   : > { %912 = vrcp.f32 %v590_v34 }
 0x2b2   : > { %v907_v35 = vpop.eup %906 }
 0x2b3   : > { %v909_v36 = vpop.eup %908 }
 0x2b4   : > { %v542_v37 = vpack.c.bf16 %v907_v35, %v909_v36 }
 0x2b6   : > { %v543_v38 = vmul.bf16 %v542_v37, %v529_v16 }
 0x2b8   : > { %884 = vmatmul.mubr.msk.bf16.vlgmr.msra.gmra.mxu0 %vm510_vm9, %v543_v38 }
 0x2ba   : > { %v911_v39 = vpop.eup %910 }
 0x2be   : > { %v913_v40 = vpop.eup %912 }
 0x2bf   : > { %v593_v41 = vpack.c.bf16 %v913_v40, %v911_v39 }
 0x2c1   : > { %v594_v42 = vmul.bf16 %v593_v41, %v580_v22 }
 0x2c3   : > { %874 = vmatmul.mubr.msk.bf16.vlgmr.msra.gmra.mxu1 %vm510_vm9, %v594_v42 }
 0x378   : > { %v679_v43 = vpop.f32.mrf.mxu0 }
 0x37a   : > { %v885_v44 = vpop.f32.mrf.mxu0 }
 0x37c   : > { %v682_v45 = vpop.f32.mrf.mxu0 }
 0x37e   : > { %v886_v46 = vpop.f32.mrf.mxu0 }
 0x383   : > { %v635_v47 = vpop.f32.mrf.mxu1 }
 0x384   : > { %v680_v49 = vadd.f32 %v679_v43, %v635_v47 }
 0x385   : > { %v875_v50 = vpop.f32.mrf.mxu1 }
 0x386   : > { %v693_v51 = vadd.f32 %v814_v48, %v680_v49 }
 0x387   : > { %v638_v52 = vpop.f32.mrf.mxu1 }
 0x388   : > { %v697_v53 = vmin.f32 %v693_v51, 0.0  ;;  %v683_v54 = vadd.f32 %v682_v45, %v638_v52  ;;  %vm695_vm11 = vcmp.gt.f32.partialorder %v693_v51, 0.0 }
 0x389   : > { %v876_v55 = vpop.f32.mrf.mxu1 }
 0x38a   : > { %v699_v56 = vmul.f32 1.442695, %v697_v53  ;;  %v694_v57 = vadd.f32 %v814_v48, %v683_v54 }
 0x38c   : > { %914 = vpow2.f32 %v699_v56  ;;  %v698_v58 = vmin.f32 %v694_v57, 0.0  ;;  %vm696_vm12 = vcmp.gt.f32.partialorder %v694_v57, 0.0 }
 0x38e   : > { %v701_v59 = vmul.f32 1.442695, %v698_v58 }
 0x390   : > { %916 = vpow2.f32 %v701_v59 }
 0x399   : > { %v915_v60 = vpop.eup %914 }
 0x39a   : > { %v815_v61 = vadd.f32 -1.0, %v915_v60 }
 0x39c   : > { %v705_v62 = vsel %vm695_vm11, %v693_v51, %v815_v61 }
 0x39d   : > { %v917_v63 = vpop.eup %916  ;;  %707 = vst.msk [vmem:[%s302_s16] sm:$0xff] %vm322_vm1, %v705_v62 }
 0x39e   : > { %v816_v0 = vadd.f32 -1.0, %v917_v63 }
 0x3a0   : > { %v706_v1 = vsel %vm696_vm12, %v694_v57, %v816_v0 }
 0x3a1   : > { %708 = vst.msk [vmem:[%s302_s16 + $0x8] sm:$0xff] %vm322_vm1, %v706_v1 }
 0x3a2 PF: > { %s17_s24 = sadd.s32 1, %s924_s24  }
 0x3a3   : > { %p14_p4 = scmp.ge.s32.totalorder %s17_s24, 5  }
 0x3a5   :  { %16 = sbr.rel (!%p14_p4) target bundleno = 1 (0x1), region = 81 }

</bundles_post_ra>
